<compile_context>
chip_gen: v6e
topology: v6e:2x2x1
jax: 0.10.0
libtpu: 0.0.40
codegen_flags: <defaults>
</compile_context>

<pallas_src>
import math

import jax
import jax.numpy as jnp
from jax import lax
from jax.experimental import pallas as pl
from jax.experimental.pallas import tpu as pltpu  # noqa: F401  (TPU backend assumed)

# ---------------- model hyper-parameters (small, BERT-like) ----------------
B = 2              # batch
S = 16             # sequence length
BS = B * S         # flattened tokens
H = 128            # hidden_size
NUM_HEADS = 4      # num_attention_heads
HEAD_DIM = H // NUM_HEADS
FF = 256           # intermediate_size
VOCAB = 64         # vocab_size
H2 = H // 2        # yes_no_head hidden
NUM_LAYERS = 6     # CustomTransformerEncoder default
N_HEAD_ROWS = 8    # padded stack: [w_ss, w_se, w_ync, w_sc[:H], w_sc[H:], 0, 0, 0]

LN_EPS_EMB = 1e-12     # BertEmbeddings LayerNorm eps
LN_EPS = 1e-5          # nn.LayerNorm default eps (encoder layers / final norm)

# lane offsets inside the per-layer packed bias/LN vector (all 128-aligned)
_OFF_BQKV = 0
_OFF_BO = 3 * H
_OFF_LN1G = 4 * H
_OFF_LN1B = 5 * H
_OFF_B1 = 6 * H
_OFF_B2 = 6 * H + FF
_OFF_LN2G = 7 * H + FF
_OFF_LN2B = 8 * H + FF
LVEC_W = 9 * H + FF            # 1408

# lane offsets inside the packed per-layer weight slab  [Wqkv | Wo | W1]
_WOFF_QKV = 0
_WOFF_WO = 3 * H
_WOFF_W1 = 4 * H
WBIG_W = 4 * H + FF            # 768


def _layernorm(x, g, b, eps):
    mu = jnp.mean(x, axis=-1, keepdims=True)
    var = jnp.mean(jnp.square(x - mu), axis=-1, keepdims=True)
    return (x - mu) * lax.rsqrt(var + eps) * g + b


# ------------------------------ fused kernel ---------------------------------
def fused_qa_kernel(emb_ref, mask_ref, wbig_ref, w2_ref, lvec_ref, gvec_ref,
                    wyn_ref, wheads_ref, bheads_ref, out_ref):
    f32 = jnp.float32
    bf16 = jnp.bfloat16
    # "A @ B.T" without materializing the transpose
    contract_last = (((1,), (1,)), ((), ()))
    scale = 1.0 / math.sqrt(HEAD_DIM)

    # block-diagonal additive score mask, built once in the wrapper and reused
    # by every layer/head (no per-loop broadcast re-materialization).
    score_mask = mask_ref[...]                                        # (BS, BS) f32

    # embedding LayerNorm
    x = _layernorm(emb_ref[...], gvec_ref[0:1, :], gvec_ref[1:2, :], LN_EPS_EMB)

    # ----------------------------- encoder layers -----------------------------
    def layer_body(l, x):
        bqkv = lvec_ref[l, :, _OFF_BQKV:_OFF_BQKV + 3 * H]            # (1, 3H)
        bo = lvec_ref[l, :, _OFF_BO:_OFF_BO + H]
        ln1_g = lvec_ref[l, :, _OFF_LN1G:_OFF_LN1G + H]
        ln1_b = lvec_ref[l, :, _OFF_LN1B:_OFF_LN1B + H]
        b1 = lvec_ref[l, :, _OFF_B1:_OFF_B1 + FF]
        b2 = lvec_ref[l, :, _OFF_B2:_OFF_B2 + H]
        ln2_g = lvec_ref[l, :, _OFF_LN2G:_OFF_LN2G + H]
        ln2_b = lvec_ref[l, :, _OFF_LN2B:_OFF_LN2B + H]

        # fused QKV projection on the flattened batch (bf16 MXU, f32 accumulate)
        wqkv = wbig_ref[l, :, _WOFF_QKV:_WOFF_QKV + 3 * H]            # (H, 3H) bf16
        qkv = jnp.dot(x.astype(bf16), wqkv, preferred_element_type=f32) + bqkv

        attn = None
        for h in range(NUM_HEADS):
            q = qkv[:, h * HEAD_DIM:(h + 1) * HEAD_DIM].astype(bf16)             # (BS, HD)
            k = qkv[:, H + h * HEAD_DIM:H + (h + 1) * HEAD_DIM].astype(bf16)
            v = qkv[:, 2 * H + h * HEAD_DIM:2 * H + (h + 1) * HEAD_DIM].astype(bf16)
            # merged-batch scores; cross-batch entries killed by the block mask
            s = (lax.dot_general(q, k, contract_last, preferred_element_type=f32)
                 * scale + score_mask)                                            # (BS, BS)
            s = s - jnp.max(s, axis=-1, keepdims=True)
            p = jnp.exp(s)
            p = p * pl.reciprocal(jnp.sum(p, axis=-1, keepdims=True), approx=True)
            ctx = jnp.dot(p.astype(bf16), v, preferred_element_type=f32)          # (BS, HD)
            # concat-free output projection: per-head block of Wo, summed
            wo_h = wbig_ref[l, h * HEAD_DIM:(h + 1) * HEAD_DIM, _WOFF_WO:_WOFF_WO + H]
            part = jnp.dot(ctx.astype(bf16), wo_h, preferred_element_type=f32)    # (BS, H)
            attn = part if attn is None else attn + part

        # residual + LayerNorm1 (bo folded into the LN input add; dropout = id)
        h1 = _layernorm(x + attn + bo, ln1_g, ln1_b, LN_EPS)

        # position-wise feed forward: Linear -> ReLU -> Linear
        w1 = wbig_ref[l, :, _WOFF_W1:_WOFF_W1 + FF]
        ff = jnp.maximum(
            jnp.dot(h1.astype(bf16), w1, preferred_element_type=f32) + b1, 0.0)
        ff = jnp.dot(ff.astype(bf16), w2_ref[l], preferred_element_type=f32) + b2
        return _layernorm(h1 + ff, ln2_g, ln2_b, LN_EPS)

    x = lax.fori_loop(0, NUM_LAYERS, layer_body, x)

    # ------------------------------ final norm --------------------------------
    enc = _layernorm(x, gvec_ref[2:3, :], gvec_ref[3:4, :], LN_EPS)   # (BS, H) f32

    # -------------------------- QA heads (batch-merged) -----------------------
    cls = jnp.concatenate([enc[b * S:b * S + 1, :] for b in range(B)], axis=0)   # (B, H)
    yh = jnp.maximum(
        jnp.dot(cls.astype(bf16), wyn_ref[0:H, :], preferred_element_type=f32)
        + gvec_ref[4:5, 0:H2], 0.0)                                               # (B, H2)
    yn = (jnp.dot(yh.astype(bf16), wyn_ref[H:H + H2, 0:2], preferred_element_type=f32)
          + gvec_ref[5:6, 0:2])                                                   # (B, 2)

    # all per-token linear heads as ONE matmul over the whole flattened batch
    # rows: 0=span_start, 1=span_end, 2=yn_conf, 3=span_conf[:H], 4=span_conf[H:]
    hb = (lax.dot_general(wheads_ref[...], enc.astype(bf16), contract_last,
                          preferred_element_type=f32) + bheads_ref[...])          # (8, BS)

    iota_s = lax.broadcasted_iota(jnp.int32, (1, S), 1)
    pad = jnp.zeros((1, H - (2 + 2 * S + 2)), f32)

    def first_argmax(logits):
        # torch.argmax first-occurrence semantics on f32 logits
        m = jnp.max(logits, axis=1, keepdims=True)
        return jnp.min(jnp.where(logits == m, iota_s, S), axis=1, keepdims=True)

    rows = []
    for b in range(B):
        lo = b * S
        ss_b = hb[0:1, lo:lo + S]                                      # (1, S)
        se_b = hb[1:2, lo:lo + S]                                      # (1, S)
        ync_b = jax.nn.sigmoid(hb[2:3, lo:lo + 1])                     # (1, 1)  CLS token
        s_idx = first_argmax(ss_b)
        e_idx = first_argmax(se_b)
        oh_s = (iota_s == s_idx).astype(f32)
        oh_e = (iota_s == e_idx).astype(f32)
        # span confidence: w_sc[:H].enc[start] + w_sc[H:].enc[end] + b_sc
        # (b_sc lives in b_heads row 3 only; row 4 bias is 0 -> no double count)
        spc_b = jax.nn.sigmoid(
            jnp.sum(hb[3:4, lo:lo + S] * oh_s, axis=1, keepdims=True)
            + jnp.sum(hb[4:5, lo:lo + S] * oh_e, axis=1, keepdims=True))          # (1, 1)
        rows.append(jnp.concatenate([yn[b:b + 1, :], ss_b, se_b, ync_b, spc_b, pad],
                                    axis=-1))

    # single lane-dense store of all head outputs
    out_ref[...] = jnp.concatenate(rows, axis=0)                       # (B, 128)


# -------------------------------- parameters ----------------------------------
def init_params(key):
    keys = iter(jax.random.split(key, 16))

    def nrm(shape, scale=0.02):
        return (scale * jax.random.normal(next(keys), shape)).astype(jnp.float32)

    bf = jnp.bfloat16
    L = NUM_LAYERS
    zeros, ones = jnp.zeros, jnp.ones

    # encoder weights, packed along lanes: [Wqkv | Wo | W1]; W2 kept separate
    wqkv = nrm((L, H, 3 * H))
    wo = nrm((L, H, H))
    w1 = nrm((L, H, FF))
    w2 = nrm((L, FF, H))
    w_big = jnp.concatenate([wqkv, wo, w1], axis=-1).astype(bf)        # (L, H, 768)

    # per-layer biases + LayerNorm params, lane-packed (all offsets 128-aligned)
    lvec = jnp.concatenate([
        zeros((L, 1, 3 * H), jnp.float32),   # bqkv
        zeros((L, 1, H), jnp.float32),       # bo
        ones((L, 1, H), jnp.float32),        # ln1_g
        zeros((L, 1, H), jnp.float32),       # ln1_b
        zeros((L, 1, FF), jnp.float32),      # b1
        zeros((L, 1, H), jnp.float32),       # b2
        ones((L, 1, H), jnp.float32),        # ln2_g
        zeros((L, 1, H), jnp.float32),       # ln2_b
    ], axis=-1)                               # (L, 1, 1408)

    # global slab: emb_ln_g/b, final_ln_g/b, b_yn1 (lanes 0:H2), b_yn2 (lanes 0:2)
    gvec = jnp.concatenate([
        ones((1, H), jnp.float32), zeros((1, H), jnp.float32),
        ones((1, H), jnp.float32), zeros((1, H), jnp.float32),
        zeros((1, H), jnp.float32),
        zeros((1, H), jnp.float32),
    ], axis=0)                                # (6, H)

    # yes/no head weights packed along sublanes: [W_yn1 (H,H2) ; W_yn2 padded (H2,H2)]
    w_yn1 = nrm((H, H2))
    w_yn2 = nrm((H2, 2))
    w_yn = jnp.concatenate(
        [w_yn1, jnp.concatenate([w_yn2, zeros((H2, H2 - 2), jnp.float32)], axis=-1)],
        axis=0).astype(bf)                    # (H + H2, H2)

    # stacked per-token head rows: ss, se, ync, sc[:H], sc[H:], pad x3
    w_heads = jnp.concatenate(
        [nrm((5, H)), zeros((N_HEAD_ROWS - 5, H), jnp.float32)], axis=0).astype(bf)
    b_heads = zeros((N_HEAD_ROWS, 1), jnp.float32)   # row 3 carries b_sc; row 4 stays 0

    return {
        'word_emb': nrm((VOCAB, H)),
        'pos_emb': nrm((S, H)),
        'tok_emb': nrm((2, H)),
        'w_big': w_big, 'w2': w2.astype(bf), 'lvec': lvec, 'gvec': gvec,
        'w_yn': w_yn, 'w_heads': w_heads, 'b_heads': b_heads,
    }


# --------------------------------- forward ------------------------------------
def medical_qa_forward(params, input_ids, attention_mask=None):
    bsz, seq = input_ids.shape
    assert bsz == B and seq == S

    # BertEmbeddings: word + position + token_type(0) embeddings (XLA glue gather);
    # the embedding LayerNorm runs inside the fused kernel.
    word = params['word_emb'][input_ids]                   # (B, S, H)
    pos = params['pos_emb'][:seq][None]                    # (1, S, H)
    tok = params['tok_emb'][0][None, None]                 # (1, 1, H)
    emb = (word + pos + tok).astype(jnp.float32).reshape(bsz * seq, H)

    # block-diagonal additive score mask over flattened tokens, built ONCE here
    if attention_mask is None:
        key_keep = jnp.ones((bsz * seq,), jnp.float32)
    else:
        key_keep = attention_mask.astype(jnp.float32).reshape(bsz * seq)
    tok_b = jnp.arange(bsz * seq, dtype=jnp.int32) // seq
    keep = (tok_b[:, None] == tok_b[None, :]) & (key_keep[None, :] > 0.5)
    score_mask = jnp.where(keep, 0.0, -1e9).astype(jnp.float32)

    args = (emb, score_mask, params['w_big'], params['w2'], params['lvec'],
            params['gvec'], params['w_yn'], params['w_heads'], params['b_heads'])

    flops = NUM_LAYERS * (
        2 * BS * H * 3 * H
        + NUM_HEADS * (2 * BS * BS * HEAD_DIM * 2 + 2 * BS * HEAD_DIM * H)
        + 2 * BS * H * FF * 2
    ) + 2 * B * H * H2 + 2 * B * H2 * 2 + 2 * N_HEAD_ROWS * H * BS
    transcendentals = NUM_LAYERS * NUM_HEADS * BS * BS + 16 * BS
    bytes_accessed = sum(int(a.size) * a.dtype.itemsize for a in args) + bsz * H * 4

    slab = pl.pallas_call(
        fused_qa_kernel,
        out_shape=jax.ShapeDtypeStruct((bsz, H), jnp.float32),
        cost_estimate=pl.CostEstimate(flops=flops, transcendentals=transcendentals,
                                      bytes_accessed=bytes_accessed),
    )(*args)

    # slice the lane-dense slab back into the five named outputs
    return {
        'yes_no_logits': slab[:, 0:2],
        'span_start_logits': slab[:, 2:2 + seq],
        'span_end_logits': slab[:, 2 + seq:2 + 2 * seq],
        'yes_no_confidence': slab[:, 2 + 2 * seq:3 + 2 * seq],
        'span_confidence': slab[:, 3 + 2 * seq:4 + 2 * seq],
    }


# ----------------------------------- main --------------------------------------
if __name__ == "__main__":
    root = jax.random.PRNGKey(0)
    pkey, ikey = jax.random.split(root)
    params = init_params(pkey)
    input_ids = jax.random.randint(ikey, (B, S), 0, VOCAB, dtype=jnp.int32)

    fwd = jax.jit(medical_qa_forward)
    out = fwd(params, input_ids)
    jax.block_until_ready(out)

    assert out['yes_no_logits'].shape == (B, 2)
    assert out['span_start_logits'].shape == (B, S)
    assert out['span_end_logits'].shape == (B, S)
    assert out['yes_no_confidence'].shape == (B, 1)
    assert out['span_confidence'].shape == (B, 1)
    for v in out.values():
        assert bool(jnp.all(jnp.isfinite(v)))
    print("KERNEL_OK")
</pallas_src>

<mosaic_0001>
module attributes {stable_mosaic.version = 11 : i64} {
  func.func @fused_qa_kernel(%arg0: memref<32x128xf32, #tpu.memory_space<vmem>>, %arg1: memref<32x32xf32, #tpu.memory_space<vmem>>, %arg2: memref<6x128x768xbf16, #tpu.memory_space<vmem>>, %arg3: memref<6x256x128xbf16, #tpu.memory_space<vmem>>, %arg4: memref<6x1x1408xf32, #tpu.memory_space<vmem>>, %arg5: memref<6x128xf32, #tpu.memory_space<vmem>>, %arg6: memref<192x64xbf16, #tpu.memory_space<vmem>>, %arg7: memref<8x128xbf16, #tpu.memory_space<vmem>>, %arg8: memref<8x1xf32, #tpu.memory_space<vmem>>, %arg9: memref<2x128xf32, #tpu.memory_space<vmem>>) attributes {dimension_semantics = [], scalar_prefetch = 0 : i64, scratch_operands = 0 : i64, tpu.core_type = #tpu.core_type<tc>} {
    %c0 = arith.constant 0 : index
    %c0_0 = arith.constant 0 : index
    %0 = vector.load %arg1[%c0, %c0_0] : memref<32x32xf32, #tpu.memory_space<vmem>>, vector<32x32xf32>
    %c0_1 = arith.constant 0 : index
    %c0_2 = arith.constant 0 : index
    %1 = vector.load %arg0[%c0_1, %c0_2] : memref<32x128xf32, #tpu.memory_space<vmem>>, vector<32x128xf32>
    %c0_3 = arith.constant 0 : index
    %c0_4 = arith.constant 0 : index
    %2 = vector.load %arg5[%c0_3, %c0_4] : memref<6x128xf32, #tpu.memory_space<vmem>>, vector<1x128xf32>
    %c1 = arith.constant 1 : index
    %c0_5 = arith.constant 0 : index
    %3 = vector.load %arg5[%c1, %c0_5] : memref<6x128xf32, #tpu.memory_space<vmem>>, vector<1x128xf32>
    %cst = arith.constant dense<0.000000e+00> : vector<32xf32>
    %4 = vector.multi_reduction <add>, %1, %cst [1] : vector<32x128xf32> to vector<32xf32>
    %5 = vector.shape_cast %4 : vector<32xf32> to vector<32x1xf32>
    %cst_6 = arith.constant 1.280000e+02 : f32
    %6 = vector.broadcast %cst_6 : f32 to vector<32x1xf32>
    %7 = arith.divf %5, %6 : vector<32x1xf32>
    %8 = vector.broadcast %7 : vector<32x1xf32> to vector<32x128xf32>
    %9 = arith.subf %1, %8 : vector<32x128xf32>
    %10 = arith.mulf %9, %9 : vector<32x128xf32>
    %cst_7 = arith.constant dense<0.000000e+00> : vector<32xf32>
    %11 = vector.multi_reduction <add>, %10, %cst_7 [1] : vector<32x128xf32> to vector<32xf32>
    %12 = vector.shape_cast %11 : vector<32xf32> to vector<32x1xf32>
    %cst_8 = arith.constant 1.280000e+02 : f32
    %13 = vector.broadcast %cst_8 : f32 to vector<32x1xf32>
    %14 = arith.divf %12, %13 : vector<32x1xf32>
    %15 = vector.broadcast %7 : vector<32x1xf32> to vector<32x128xf32>
    %16 = arith.subf %1, %15 : vector<32x128xf32>
    %cst_9 = arith.constant 9.99999996E-13 : f32
    %17 = vector.broadcast %cst_9 : f32 to vector<32x1xf32>
    %18 = arith.addf %14, %17 : vector<32x1xf32>
    %19 = math.rsqrt %18 : vector<32x1xf32>
    %20 = vector.broadcast %19 : vector<32x1xf32> to vector<32x128xf32>
    %21 = arith.mulf %16, %20 : vector<32x128xf32>
    %22 = vector.broadcast %2 : vector<1x128xf32> to vector<32x128xf32>
    %23 = arith.mulf %21, %22 : vector<32x128xf32>
    %24 = vector.broadcast %3 : vector<1x128xf32> to vector<32x128xf32>
    %25 = arith.addf %23, %24 : vector<32x128xf32>
    %c0_i32 = arith.constant 0 : i32
    %c6_i32 = arith.constant 6 : i32
    %26 = arith.addi %c0_i32, %c6_i32 : i32
    %c1_i32 = arith.constant 1 : i32
    %27 = scf.for %arg10 = %c0_i32 to %26 step %c1_i32 iter_args(%arg11 = %25) -> (vector<32x128xf32>)  : i32 {
      %175 = arith.index_cast %arg10 : i32 to index
      %c0_53 = arith.constant 0 : index
      %c0_54 = arith.constant 0 : index
      %176 = vector.load %arg4[%175, %c0_53, %c0_54] : memref<6x1x1408xf32, #tpu.memory_space<vmem>>, vector<1x1x384xf32>
      %177 = vector.shape_cast %176 : vector<1x1x384xf32> to vector<1x384xf32>
      %178 = arith.index_cast %arg10 : i32 to index
      %c0_55 = arith.constant 0 : index
      %c384 = arith.constant 384 : index
      %179 = vector.load %arg4[%178, %c0_55, %c384] : memref<6x1x1408xf32, #tpu.memory_space<vmem>>, vector<1x1x128xf32>
      %180 = vector.shape_cast %179 : vector<1x1x128xf32> to vector<1x128xf32>
      %181 = arith.index_cast %arg10 : i32 to index
      %c0_56 = arith.constant 0 : index
      %c512 = arith.constant 512 : index
      %182 = vector.load %arg4[%181, %c0_56, %c512] : memref<6x1x1408xf32, #tpu.memory_space<vmem>>, vector<1x1x128xf32>
      %183 = vector.shape_cast %182 : vector<1x1x128xf32> to vector<1x128xf32>
      %184 = arith.index_cast %arg10 : i32 to index
      %c0_57 = arith.constant 0 : index
      %c640 = arith.constant 640 : index
      %185 = vector.load %arg4[%184, %c0_57, %c640] : memref<6x1x1408xf32, #tpu.memory_space<vmem>>, vector<1x1x128xf32>
      %186 = vector.shape_cast %185 : vector<1x1x128xf32> to vector<1x128xf32>
      %187 = arith.index_cast %arg10 : i32 to index
      %c0_58 = arith.constant 0 : index
      %c768 = arith.constant 768 : index
      %188 = vector.load %arg4[%187, %c0_58, %c768] : memref<6x1x1408xf32, #tpu.memory_space<vmem>>, vector<1x1x256xf32>
      %189 = vector.shape_cast %188 : vector<1x1x256xf32> to vector<1x256xf32>
      %190 = arith.index_cast %arg10 : i32 to index
      %c0_59 = arith.constant 0 : index
      %c1024 = arith.constant 1024 : index
      %191 = vector.load %arg4[%190, %c0_59, %c1024] : memref<6x1x1408xf32, #tpu.memory_space<vmem>>, vector<1x1x128xf32>
      %192 = vector.shape_cast %191 : vector<1x1x128xf32> to vector<1x128xf32>
      %193 = arith.index_cast %arg10 : i32 to index
      %c0_60 = arith.constant 0 : index
      %c1152 = arith.constant 1152 : index
      %194 = vector.load %arg4[%193, %c0_60, %c1152] : memref<6x1x1408xf32, #tpu.memory_space<vmem>>, vector<1x1x128xf32>
      %195 = vector.shape_cast %194 : vector<1x1x128xf32> to vector<1x128xf32>
      %196 = arith.index_cast %arg10 : i32 to index
      %c0_61 = arith.constant 0 : index
      %c1280 = arith.constant 1280 : index
      %197 = vector.load %arg4[%196, %c0_61, %c1280] : memref<6x1x1408xf32, #tpu.memory_space<vmem>>, vector<1x1x128xf32>
      %198 = vector.shape_cast %197 : vector<1x1x128xf32> to vector<1x128xf32>
      %199 = arith.index_cast %arg10 : i32 to index
      %c0_62 = arith.constant 0 : index
      %c0_63 = arith.constant 0 : index
      %200 = vector.load %arg2[%199, %c0_62, %c0_63] : memref<6x128x768xbf16, #tpu.memory_space<vmem>>, vector<1x128x384xbf16>
      %201 = vector.shape_cast %200 : vector<1x128x384xbf16> to vector<128x384xbf16>
      %202 = arith.truncf %arg11 : vector<32x128xf32> to vector<32x128xbf16>
      %cst_64 = arith.constant dense<0.000000e+00> : vector<32x384xf32>
      %203 = tpu.matmul %202, %201, %cst_64 {dimension_numbers = #tpu.dot_dimension_numbers<[1], [0], [0], [1], [0, 0, 1, 1], [], []>} : vector<32x128xbf16>, vector<128x384xbf16>, vector<32x384xf32> -> vector<32x384xf32>
      %204 = vector.broadcast %177 : vector<1x384xf32> to vector<32x384xf32>
      %205 = arith.addf %203, %204 : vector<32x384xf32>
      %206 = vector.extract_strided_slice %205 {offsets = [0, 0], sizes = [32, 32], strides = [1, 1]} : vector<32x384xf32> to vector<32x32xf32>
      %207 = arith.truncf %206 : vector<32x32xf32> to vector<32x32xbf16>
      %208 = vector.extract_strided_slice %205 {offsets = [0, 128], sizes = [32, 32], strides = [1, 1]} : vector<32x384xf32> to vector<32x32xf32>
      %209 = arith.truncf %208 : vector<32x32xf32> to vector<32x32xbf16>
      %210 = vector.extract_strided_slice %205 {offsets = [0, 256], sizes = [32, 32], strides = [1, 1]} : vector<32x384xf32> to vector<32x32xf32>
      %211 = arith.truncf %210 : vector<32x32xf32> to vector<32x32xbf16>
      %cst_65 = arith.constant dense<0.000000e+00> : vector<32x32xf32>
      %212 = tpu.matmul %207, %209, %cst_65 {dimension_numbers = #tpu.dot_dimension_numbers<[1], [1], [0], [0], [0, 0, 1, 0], [], []>} : vector<32x32xbf16>, vector<32x32xbf16>, vector<32x32xf32> -> vector<32x32xf32>
      %cst_66 = arith.constant 0.176776692 : f32
      %213 = vector.broadcast %cst_66 : f32 to vector<32x32xf32>
      %214 = arith.mulf %212, %213 : vector<32x32xf32>
      %215 = arith.addf %214, %0 : vector<32x32xf32>
      %cst_67 = arith.constant dense<0xFF800000> : vector<32xf32>
      %216 = vector.multi_reduction <maximumf>, %215, %cst_67 [1] : vector<32x32xf32> to vector<32xf32>
      %217 = vector.shape_cast %216 : vector<32xf32> to vector<32x1xf32>
      %218 = vector.broadcast %217 : vector<32x1xf32> to vector<32x32xf32>
      %219 = arith.subf %215, %218 : vector<32x32xf32>
      %220 = math.exp %219 : vector<32x32xf32>
      %cst_68 = arith.constant dense<0.000000e+00> : vector<32xf32>
      %221 = vector.multi_reduction <add>, %220, %cst_68 [1] : vector<32x32xf32> to vector<32xf32>
      %222 = vector.shape_cast %221 : vector<32xf32> to vector<32x1xf32>
      %223 = tpu.reciprocal %222 {approx = true} : vector<32x1xf32> -> vector<32x1xf32>
      %224 = vector.broadcast %223 : vector<32x1xf32> to vector<32x32xf32>
      %225 = arith.mulf %220, %224 : vector<32x32xf32>
      %226 = arith.truncf %225 : vector<32x32xf32> to vector<32x32xbf16>
      %cst_69 = arith.constant dense<0.000000e+00> : vector<32x32xf32>
      %227 = tpu.matmul %226, %211, %cst_69 {dimension_numbers = #tpu.dot_dimension_numbers<[1], [0], [0], [1], [0, 0, 1, 1], [], []>} : vector<32x32xbf16>, vector<32x32xbf16>, vector<32x32xf32> -> vector<32x32xf32>
      %228 = arith.index_cast %arg10 : i32 to index
      %c0_70 = arith.constant 0 : index
      %c384_71 = arith.constant 384 : index
      %229 = vector.load %arg2[%228, %c0_70, %c384_71] : memref<6x128x768xbf16, #tpu.memory_space<vmem>>, vector<1x32x128xbf16>
      %230 = vector.shape_cast %229 : vector<1x32x128xbf16> to vector<32x128xbf16>
      %231 = arith.truncf %227 : vector<32x32xf32> to vector<32x32xbf16>
      %cst_72 = arith.constant dense<0.000000e+00> : vector<32x128xf32>
      %232 = tpu.matmul %231, %230, %cst_72 {dimension_numbers = #tpu.dot_dimension_numbers<[1], [0], [0], [1], [0, 0, 1, 1], [], []>} : vector<32x32xbf16>, vector<32x128xbf16>, vector<32x128xf32> -> vector<32x128xf32>
      %233 = vector.extract_strided_slice %205 {offsets = [0, 32], sizes = [32, 32], strides = [1, 1]} : vector<32x384xf32> to vector<32x32xf32>
      %234 = arith.truncf %233 : vector<32x32xf32> to vector<32x32xbf16>
      %235 = vector.extract_strided_slice %205 {offsets = [0, 160], sizes = [32, 32], strides = [1, 1]} : vector<32x384xf32> to vector<32x32xf32>
      %236 = arith.truncf %235 : vector<32x32xf32> to vector<32x32xbf16>
      %237 = vector.extract_strided_slice %205 {offsets = [0, 288], sizes = [32, 32], strides = [1, 1]} : vector<32x384xf32> to vector<32x32xf32>
      %238 = arith.truncf %237 : vector<32x32xf32> to vector<32x32xbf16>
      %cst_73 = arith.constant dense<0.000000e+00> : vector<32x32xf32>
      %239 = tpu.matmul %234, %236, %cst_73 {dimension_numbers = #tpu.dot_dimension_numbers<[1], [1], [0], [0], [0, 0, 1, 0], [], []>} : vector<32x32xbf16>, vector<32x32xbf16>, vector<32x32xf32> -> vector<32x32xf32>
      %cst_74 = arith.constant 0.176776692 : f32
      %240 = vector.broadcast %cst_74 : f32 to vector<32x32xf32>
      %241 = arith.mulf %239, %240 : vector<32x32xf32>
      %242 = arith.addf %241, %0 : vector<32x32xf32>
      %cst_75 = arith.constant dense<0xFF800000> : vector<32xf32>
      %243 = vector.multi_reduction <maximumf>, %242, %cst_75 [1] : vector<32x32xf32> to vector<32xf32>
      %244 = vector.shape_cast %243 : vector<32xf32> to vector<32x1xf32>
      %245 = vector.broadcast %244 : vector<32x1xf32> to vector<32x32xf32>
      %246 = arith.subf %242, %245 : vector<32x32xf32>
      %247 = math.exp %246 : vector<32x32xf32>
      %cst_76 = arith.constant dense<0.000000e+00> : vector<32xf32>
      %248 = vector.multi_reduction <add>, %247, %cst_76 [1] : vector<32x32xf32> to vector<32xf32>
      %249 = vector.shape_cast %248 : vector<32xf32> to vector<32x1xf32>
      %250 = tpu.reciprocal %249 {approx = true} : vector<32x1xf32> -> vector<32x1xf32>
      %251 = vector.broadcast %250 : vector<32x1xf32> to vector<32x32xf32>
      %252 = arith.mulf %247, %251 : vector<32x32xf32>
      %253 = arith.truncf %252 : vector<32x32xf32> to vector<32x32xbf16>
      %cst_77 = arith.constant dense<0.000000e+00> : vector<32x32xf32>
      %254 = tpu.matmul %253, %238, %cst_77 {dimension_numbers = #tpu.dot_dimension_numbers<[1], [0], [0], [1], [0, 0, 1, 1], [], []>} : vector<32x32xbf16>, vector<32x32xbf16>, vector<32x32xf32> -> vector<32x32xf32>
      %255 = arith.index_cast %arg10 : i32 to index
      %c32 = arith.constant 32 : index
      %c384_78 = arith.constant 384 : index
      %256 = vector.load %arg2[%255, %c32, %c384_78] : memref<6x128x768xbf16, #tpu.memory_space<vmem>>, vector<1x32x128xbf16>
      %257 = vector.shape_cast %256 : vector<1x32x128xbf16> to vector<32x128xbf16>
      %258 = arith.truncf %254 : vector<32x32xf32> to vector<32x32xbf16>
      %cst_79 = arith.constant dense<0.000000e+00> : vector<32x128xf32>
      %259 = tpu.matmul %258, %257, %cst_79 {dimension_numbers = #tpu.dot_dimension_numbers<[1], [0], [0], [1], [0, 0, 1, 1], [], []>} : vector<32x32xbf16>, vector<32x128xbf16>, vector<32x128xf32> -> vector<32x128xf32>
      %260 = arith.addf %232, %259 : vector<32x128xf32>
      %261 = vector.extract_strided_slice %205 {offsets = [0, 64], sizes = [32, 32], strides = [1, 1]} : vector<32x384xf32> to vector<32x32xf32>
      %262 = arith.truncf %261 : vector<32x32xf32> to vector<32x32xbf16>
      %263 = vector.extract_strided_slice %205 {offsets = [0, 192], sizes = [32, 32], strides = [1, 1]} : vector<32x384xf32> to vector<32x32xf32>
      %264 = arith.truncf %263 : vector<32x32xf32> to vector<32x32xbf16>
      %265 = vector.extract_strided_slice %205 {offsets = [0, 320], sizes = [32, 32], strides = [1, 1]} : vector<32x384xf32> to vector<32x32xf32>
      %266 = arith.truncf %265 : vector<32x32xf32> to vector<32x32xbf16>
      %cst_80 = arith.constant dense<0.000000e+00> : vector<32x32xf32>
      %267 = tpu.matmul %262, %264, %cst_80 {dimension_numbers = #tpu.dot_dimension_numbers<[1], [1], [0], [0], [0, 0, 1, 0], [], []>} : vector<32x32xbf16>, vector<32x32xbf16>, vector<32x32xf32> -> vector<32x32xf32>
      %cst_81 = arith.constant 0.176776692 : f32
      %268 = vector.broadcast %cst_81 : f32 to vector<32x32xf32>
      %269 = arith.mulf %267, %268 : vector<32x32xf32>
      %270 = arith.addf %269, %0 : vector<32x32xf32>
      %cst_82 = arith.constant dense<0xFF800000> : vector<32xf32>
      %271 = vector.multi_reduction <maximumf>, %270, %cst_82 [1] : vector<32x32xf32> to vector<32xf32>
      %272 = vector.shape_cast %271 : vector<32xf32> to vector<32x1xf32>
      %273 = vector.broadcast %272 : vector<32x1xf32> to vector<32x32xf32>
      %274 = arith.subf %270, %273 : vector<32x32xf32>
      %275 = math.exp %274 : vector<32x32xf32>
      %cst_83 = arith.constant dense<0.000000e+00> : vector<32xf32>
      %276 = vector.multi_reduction <add>, %275, %cst_83 [1] : vector<32x32xf32> to vector<32xf32>
      %277 = vector.shape_cast %276 : vector<32xf32> to vector<32x1xf32>
      %278 = tpu.reciprocal %277 {approx = true} : vector<32x1xf32> -> vector<32x1xf32>
      %279 = vector.broadcast %278 : vector<32x1xf32> to vector<32x32xf32>
      %280 = arith.mulf %275, %279 : vector<32x32xf32>
      %281 = arith.truncf %280 : vector<32x32xf32> to vector<32x32xbf16>
      %cst_84 = arith.constant dense<0.000000e+00> : vector<32x32xf32>
      %282 = tpu.matmul %281, %266, %cst_84 {dimension_numbers = #tpu.dot_dimension_numbers<[1], [0], [0], [1], [0, 0, 1, 1], [], []>} : vector<32x32xbf16>, vector<32x32xbf16>, vector<32x32xf32> -> vector<32x32xf32>
      %283 = arith.index_cast %arg10 : i32 to index
      %c64 = arith.constant 64 : index
      %c384_85 = arith.constant 384 : index
      %284 = vector.load %arg2[%283, %c64, %c384_85] : memref<6x128x768xbf16, #tpu.memory_space<vmem>>, vector<1x32x128xbf16>
      %285 = vector.shape_cast %284 : vector<1x32x128xbf16> to vector<32x128xbf16>
      %286 = arith.truncf %282 : vector<32x32xf32> to vector<32x32xbf16>
      %cst_86 = arith.constant dense<0.000000e+00> : vector<32x128xf32>
      %287 = tpu.matmul %286, %285, %cst_86 {dimension_numbers = #tpu.dot_dimension_numbers<[1], [0], [0], [1], [0, 0, 1, 1], [], []>} : vector<32x32xbf16>, vector<32x128xbf16>, vector<32x128xf32> -> vector<32x128xf32>
      %288 = arith.addf %260, %287 : vector<32x128xf32>
      %289 = vector.extract_strided_slice %205 {offsets = [0, 96], sizes = [32, 32], strides = [1, 1]} : vector<32x384xf32> to vector<32x32xf32>
      %290 = arith.truncf %289 : vector<32x32xf32> to vector<32x32xbf16>
      %291 = vector.extract_strided_slice %205 {offsets = [0, 224], sizes = [32, 32], strides = [1, 1]} : vector<32x384xf32> to vector<32x32xf32>
      %292 = arith.truncf %291 : vector<32x32xf32> to vector<32x32xbf16>
      %293 = vector.extract_strided_slice %205 {offsets = [0, 352], sizes = [32, 32], strides = [1, 1]} : vector<32x384xf32> to vector<32x32xf32>
      %294 = arith.truncf %293 : vector<32x32xf32> to vector<32x32xbf16>
      %cst_87 = arith.constant dense<0.000000e+00> : vector<32x32xf32>
      %295 = tpu.matmul %290, %292, %cst_87 {dimension_numbers = #tpu.dot_dimension_numbers<[1], [1], [0], [0], [0, 0, 1, 0], [], []>} : vector<32x32xbf16>, vector<32x32xbf16>, vector<32x32xf32> -> vector<32x32xf32>
      %cst_88 = arith.constant 0.176776692 : f32
      %296 = vector.broadcast %cst_88 : f32 to vector<32x32xf32>
      %297 = arith.mulf %295, %296 : vector<32x32xf32>
      %298 = arith.addf %297, %0 : vector<32x32xf32>
      %cst_89 = arith.constant dense<0xFF800000> : vector<32xf32>
      %299 = vector.multi_reduction <maximumf>, %298, %cst_89 [1] : vector<32x32xf32> to vector<32xf32>
      %300 = vector.shape_cast %299 : vector<32xf32> to vector<32x1xf32>
      %301 = vector.broadcast %300 : vector<32x1xf32> to vector<32x32xf32>
      %302 = arith.subf %298, %301 : vector<32x32xf32>
      %303 = math.exp %302 : vector<32x32xf32>
      %cst_90 = arith.constant dense<0.000000e+00> : vector<32xf32>
      %304 = vector.multi_reduction <add>, %303, %cst_90 [1] : vector<32x32xf32> to vector<32xf32>
      %305 = vector.shape_cast %304 : vector<32xf32> to vector<32x1xf32>
      %306 = tpu.reciprocal %305 {approx = true} : vector<32x1xf32> -> vector<32x1xf32>
      %307 = vector.broadcast %306 : vector<32x1xf32> to vector<32x32xf32>
      %308 = arith.mulf %303, %307 : vector<32x32xf32>
      %309 = arith.truncf %308 : vector<32x32xf32> to vector<32x32xbf16>
      %cst_91 = arith.constant dense<0.000000e+00> : vector<32x32xf32>
      %310 = tpu.matmul %309, %294, %cst_91 {dimension_numbers = #tpu.dot_dimension_numbers<[1], [0], [0], [1], [0, 0, 1, 1], [], []>} : vector<32x32xbf16>, vector<32x32xbf16>, vector<32x32xf32> -> vector<32x32xf32>
      %311 = arith.index_cast %arg10 : i32 to index
      %c96 = arith.constant 96 : index
      %c384_92 = arith.constant 384 : index
      %312 = vector.load %arg2[%311, %c96, %c384_92] : memref<6x128x768xbf16, #tpu.memory_space<vmem>>, vector<1x32x128xbf16>
      %313 = vector.shape_cast %312 : vector<1x32x128xbf16> to vector<32x128xbf16>
      %314 = arith.truncf %310 : vector<32x32xf32> to vector<32x32xbf16>
      %cst_93 = arith.constant dense<0.000000e+00> : vector<32x128xf32>
      %315 = tpu.matmul %314, %313, %cst_93 {dimension_numbers = #tpu.dot_dimension_numbers<[1], [0], [0], [1], [0, 0, 1, 1], [], []>} : vector<32x32xbf16>, vector<32x128xbf16>, vector<32x128xf32> -> vector<32x128xf32>
      %316 = arith.addf %288, %315 : vector<32x128xf32>
      %317 = arith.addf %arg11, %316 : vector<32x128xf32>
      %318 = vector.broadcast %180 : vector<1x128xf32> to vector<32x128xf32>
      %319 = arith.addf %317, %318 : vector<32x128xf32>
      %cst_94 = arith.constant dense<0.000000e+00> : vector<32xf32>
      %320 = vector.multi_reduction <add>, %319, %cst_94 [1] : vector<32x128xf32> to vector<32xf32>
      %321 = vector.shape_cast %320 : vector<32xf32> to vector<32x1xf32>
      %cst_95 = arith.constant 1.280000e+02 : f32
      %322 = vector.broadcast %cst_95 : f32 to vector<32x1xf32>
      %323 = arith.divf %321, %322 : vector<32x1xf32>
      %324 = vector.broadcast %323 : vector<32x1xf32> to vector<32x128xf32>
      %325 = arith.subf %319, %324 : vector<32x128xf32>
      %326 = arith.mulf %325, %325 : vector<32x128xf32>
      %cst_96 = arith.constant dense<0.000000e+00> : vector<32xf32>
      %327 = vector.multi_reduction <add>, %326, %cst_96 [1] : vector<32x128xf32> to vector<32xf32>
      %328 = vector.shape_cast %327 : vector<32xf32> to vector<32x1xf32>
      %cst_97 = arith.constant 1.280000e+02 : f32
      %329 = vector.broadcast %cst_97 : f32 to vector<32x1xf32>
      %330 = arith.divf %328, %329 : vector<32x1xf32>
      %331 = vector.broadcast %323 : vector<32x1xf32> to vector<32x128xf32>
      %332 = arith.subf %319, %331 : vector<32x128xf32>
      %cst_98 = arith.constant 9.99999974E-6 : f32
      %333 = vector.broadcast %cst_98 : f32 to vector<32x1xf32>
      %334 = arith.addf %330, %333 : vector<32x1xf32>
      %335 = math.rsqrt %334 : vector<32x1xf32>
      %336 = vector.broadcast %335 : vector<32x1xf32> to vector<32x128xf32>
      %337 = arith.mulf %332, %336 : vector<32x128xf32>
      %338 = vector.broadcast %183 : vector<1x128xf32> to vector<32x128xf32>
      %339 = arith.mulf %337, %338 : vector<32x128xf32>
      %340 = vector.broadcast %186 : vector<1x128xf32> to vector<32x128xf32>
      %341 = arith.addf %339, %340 : vector<32x128xf32>
      %342 = arith.index_cast %arg10 : i32 to index
      %c0_99 = arith.constant 0 : index
      %c512_100 = arith.constant 512 : index
      %343 = vector.load %arg2[%342, %c0_99, %c512_100] : memref<6x128x768xbf16, #tpu.memory_space<vmem>>, vector<1x128x256xbf16>
      %344 = vector.shape_cast %343 : vector<1x128x256xbf16> to vector<128x256xbf16>
      %345 = arith.truncf %341 : vector<32x128xf32> to vector<32x128xbf16>
      %cst_101 = arith.constant dense<0.000000e+00> : vector<32x256xf32>
      %346 = tpu.matmul %345, %344, %cst_101 {dimension_numbers = #tpu.dot_dimension_numbers<[1], [0], [0], [1], [0, 0, 1, 1], [], []>} : vector<32x128xbf16>, vector<128x256xbf16>, vector<32x256xf32> -> vector<32x256xf32>
      %347 = vector.broadcast %189 : vector<1x256xf32> to vector<32x256xf32>
      %348 = arith.addf %346, %347 : vector<32x256xf32>
      %cst_102 = arith.constant 0.000000e+00 : f32
      %349 = vector.broadcast %cst_102 : f32 to vector<32x256xf32>
      %350 = arith.maximumf %348, %349 : vector<32x256xf32>
      %351 = arith.truncf %350 : vector<32x256xf32> to vector<32x256xbf16>
      %352 = arith.index_cast %arg10 : i32 to index
      %c0_103 = arith.constant 0 : index
      %c0_104 = arith.constant 0 : index
      %353 = vector.load %arg3[%352, %c0_103, %c0_104] : memref<6x256x128xbf16, #tpu.memory_space<vmem>>, vector<1x256x128xbf16>
      %354 = vector.shape_cast %353 : vector<1x256x128xbf16> to vector<256x128xbf16>
      %cst_105 = arith.constant dense<0.000000e+00> : vector<32x128xf32>
      %355 = tpu.matmul %351, %354, %cst_105 {dimension_numbers = #tpu.dot_dimension_numbers<[1], [0], [0], [1], [0, 0, 1, 1], [], []>} : vector<32x256xbf16>, vector<256x128xbf16>, vector<32x128xf32> -> vector<32x128xf32>
      %356 = vector.broadcast %192 : vector<1x128xf32> to vector<32x128xf32>
      %357 = arith.addf %355, %356 : vector<32x128xf32>
      %358 = arith.addf %341, %357 : vector<32x128xf32>
      %cst_106 = arith.constant dense<0.000000e+00> : vector<32xf32>
      %359 = vector.multi_reduction <add>, %358, %cst_106 [1] : vector<32x128xf32> to vector<32xf32>
      %360 = vector.shape_cast %359 : vector<32xf32> to vector<32x1xf32>
      %cst_107 = arith.constant 1.280000e+02 : f32
      %361 = vector.broadcast %cst_107 : f32 to vector<32x1xf32>
      %362 = arith.divf %360, %361 : vector<32x1xf32>
      %363 = vector.broadcast %362 : vector<32x1xf32> to vector<32x128xf32>
      %364 = arith.subf %358, %363 : vector<32x128xf32>
      %365 = arith.mulf %364, %364 : vector<32x128xf32>
      %cst_108 = arith.constant dense<0.000000e+00> : vector<32xf32>
      %366 = vector.multi_reduction <add>, %365, %cst_108 [1] : vector<32x128xf32> to vector<32xf32>
      %367 = vector.shape_cast %366 : vector<32xf32> to vector<32x1xf32>
      %cst_109 = arith.constant 1.280000e+02 : f32
      %368 = vector.broadcast %cst_109 : f32 to vector<32x1xf32>
      %369 = arith.divf %367, %368 : vector<32x1xf32>
      %370 = vector.broadcast %362 : vector<32x1xf32> to vector<32x128xf32>
      %371 = arith.subf %358, %370 : vector<32x128xf32>
      %cst_110 = arith.constant 9.99999974E-6 : f32
      %372 = vector.broadcast %cst_110 : f32 to vector<32x1xf32>
      %373 = arith.addf %369, %372 : vector<32x1xf32>
      %374 = math.rsqrt %373 : vector<32x1xf32>
      %375 = vector.broadcast %374 : vector<32x1xf32> to vector<32x128xf32>
      %376 = arith.mulf %371, %375 : vector<32x128xf32>
      %377 = vector.broadcast %195 : vector<1x128xf32> to vector<32x128xf32>
      %378 = arith.mulf %376, %377 : vector<32x128xf32>
      %379 = vector.broadcast %198 : vector<1x128xf32> to vector<32x128xf32>
      %380 = arith.addf %378, %379 : vector<32x128xf32>
      scf.yield %380 : vector<32x128xf32>
    }
    %c6_i32_10 = arith.constant 6 : i32
    %c2 = arith.constant 2 : index
    %c0_11 = arith.constant 0 : index
    %28 = vector.load %arg5[%c2, %c0_11] : memref<6x128xf32, #tpu.memory_space<vmem>>, vector<1x128xf32>
    %c3 = arith.constant 3 : index
    %c0_12 = arith.constant 0 : index
    %29 = vector.load %arg5[%c3, %c0_12] : memref<6x128xf32, #tpu.memory_space<vmem>>, vector<1x128xf32>
    %cst_13 = arith.constant dense<0.000000e+00> : vector<32xf32>
    %30 = vector.multi_reduction <add>, %27, %cst_13 [1] : vector<32x128xf32> to vector<32xf32>
    %31 = vector.shape_cast %30 : vector<32xf32> to vector<32x1xf32>
    %cst_14 = arith.constant 1.280000e+02 : f32
    %32 = vector.broadcast %cst_14 : f32 to vector<32x1xf32>
    %33 = arith.divf %31, %32 : vector<32x1xf32>
    %34 = vector.broadcast %33 : vector<32x1xf32> to vector<32x128xf32>
    %35 = arith.subf %27, %34 : vector<32x128xf32>
    %36 = arith.mulf %35, %35 : vector<32x128xf32>
    %cst_15 = arith.constant dense<0.000000e+00> : vector<32xf32>
    %37 = vector.multi_reduction <add>, %36, %cst_15 [1] : vector<32x128xf32> to vector<32xf32>
    %38 = vector.shape_cast %37 : vector<32xf32> to vector<32x1xf32>
    %cst_16 = arith.constant 1.280000e+02 : f32
    %39 = vector.broadcast %cst_16 : f32 to vector<32x1xf32>
    %40 = arith.divf %38, %39 : vector<32x1xf32>
    %41 = vector.broadcast %33 : vector<32x1xf32> to vector<32x128xf32>
    %42 = arith.subf %27, %41 : vector<32x128xf32>
    %cst_17 = arith.constant 9.99999974E-6 : f32
    %43 = vector.broadcast %cst_17 : f32 to vector<32x1xf32>
    %44 = arith.addf %40, %43 : vector<32x1xf32>
    %45 = math.rsqrt %44 : vector<32x1xf32>
    %46 = vector.broadcast %45 : vector<32x1xf32> to vector<32x128xf32>
    %47 = arith.mulf %42, %46 : vector<32x128xf32>
    %48 = vector.broadcast %28 : vector<1x128xf32> to vector<32x128xf32>
    %49 = arith.mulf %47, %48 : vector<32x128xf32>
    %50 = vector.broadcast %29 : vector<1x128xf32> to vector<32x128xf32>
    %51 = arith.addf %49, %50 : vector<32x128xf32>
    %52 = vector.extract_strided_slice %51 {offsets = [0, 0], sizes = [1, 128], strides = [1, 1]} : vector<32x128xf32> to vector<1x128xf32>
    %53 = vector.extract_strided_slice %51 {offsets = [16, 0], sizes = [1, 128], strides = [1, 1]} : vector<32x128xf32> to vector<1x128xf32>
    %54 = tpu.concatenate %52, %53 in 0 : vector<1x128xf32>, vector<1x128xf32> -> vector<2x128xf32>
    %55 = arith.truncf %54 : vector<2x128xf32> to vector<2x128xbf16>
    %c0_18 = arith.constant 0 : index
    %c0_19 = arith.constant 0 : index
    %56 = vector.load %arg6[%c0_18, %c0_19] : memref<192x64xbf16, #tpu.memory_space<vmem>>, vector<128x64xbf16>
    %cst_20 = arith.constant dense<0.000000e+00> : vector<2x64xf32>
    %57 = tpu.matmul %55, %56, %cst_20 {dimension_numbers = #tpu.dot_dimension_numbers<[1], [0], [0], [1], [0, 0, 1, 1], [], []>} : vector<2x128xbf16>, vector<128x64xbf16>, vector<2x64xf32> -> vector<2x64xf32>
    %c4 = arith.constant 4 : index
    %c0_21 = arith.constant 0 : index
    %58 = vector.load %arg5[%c4, %c0_21] : memref<6x128xf32, #tpu.memory_space<vmem>>, vector<1x64xf32>
    %59 = vector.broadcast %58 : vector<1x64xf32> to vector<2x64xf32>
    %60 = arith.addf %57, %59 : vector<2x64xf32>
    %cst_22 = arith.constant 0.000000e+00 : f32
    %61 = vector.broadcast %cst_22 : f32 to vector<2x64xf32>
    %62 = arith.maximumf %60, %61 : vector<2x64xf32>
    %63 = arith.truncf %62 : vector<2x64xf32> to vector<2x64xbf16>
    %c128 = arith.constant 128 : index
    %c0_23 = arith.constant 0 : index
    %64 = vector.load %arg6[%c128, %c0_23] : memref<192x64xbf16, #tpu.memory_space<vmem>>, vector<64x2xbf16>
    %cst_24 = arith.constant dense<0.000000e+00> : vector<2x2xf32>
    %65 = tpu.matmul %63, %64, %cst_24 {dimension_numbers = #tpu.dot_dimension_numbers<[1], [0], [0], [1], [0, 0, 1, 1], [], []>} : vector<2x64xbf16>, vector<64x2xbf16>, vector<2x2xf32> -> vector<2x2xf32>
    %c5 = arith.constant 5 : index
    %c0_25 = arith.constant 0 : index
    %66 = vector.load %arg5[%c5, %c0_25] : memref<6x128xf32, #tpu.memory_space<vmem>>, vector<1x2xf32>
    %67 = vector.broadcast %66 : vector<1x2xf32> to vector<2x2xf32>
    %68 = arith.addf %65, %67 : vector<2x2xf32>
    %c0_26 = arith.constant 0 : index
    %c0_27 = arith.constant 0 : index
    %69 = vector.load %arg7[%c0_26, %c0_27] : memref<8x128xbf16, #tpu.memory_space<vmem>>, vector<8x128xbf16>
    %70 = arith.truncf %51 : vector<32x128xf32> to vector<32x128xbf16>
    %cst_28 = arith.constant dense<0.000000e+00> : vector<8x32xf32>
    %71 = tpu.matmul %69, %70, %cst_28 {dimension_numbers = #tpu.dot_dimension_numbers<[1], [1], [0], [0], [0, 0, 1, 0], [], []>} : vector<8x128xbf16>, vector<32x128xbf16>, vector<8x32xf32> -> vector<8x32xf32>
    %c0_29 = arith.constant 0 : index
    %c0_30 = arith.constant 0 : index
    %72 = vector.load %arg8[%c0_29, %c0_30] : memref<8x1xf32, #tpu.memory_space<vmem>>, vector<8x1xf32>
    %73 = vector.broadcast %72 : vector<8x1xf32> to vector<8x32xf32>
    %74 = arith.addf %71, %73 : vector<8x32xf32>
    %75 = tpu.iota {dimensions = array<i32: 1>} : vector<1x16xi32>
    %cst_31 = arith.constant 0.000000e+00 : f32
    %76 = vector.broadcast %cst_31 : f32 to vector<1x92xf32>
    %77 = vector.extract_strided_slice %74 {offsets = [0, 0], sizes = [1, 16], strides = [1, 1]} : vector<8x32xf32> to vector<1x16xf32>
    %78 = vector.extract_strided_slice %74 {offsets = [1, 0], sizes = [1, 16], strides = [1, 1]} : vector<8x32xf32> to vector<1x16xf32>
    %79 = vector.extract_strided_slice %74 {offsets = [2, 0], sizes = [1, 1], strides = [1, 1]} : vector<8x32xf32> to vector<1x1xf32>
    %80 = arith.negf %79 : vector<1x1xf32>
    %81 = math.exp %80 : vector<1x1xf32>
    %cst_32 = arith.constant 1.000000e+00 : f32
    %82 = vector.broadcast %cst_32 : f32 to vector<1x1xf32>
    %83 = arith.addf %82, %81 : vector<1x1xf32>
    %84 = arith.divf %82, %83 : vector<1x1xf32>
    %cst_33 = arith.constant dense<0xFF800000> : vector<1xf32>
    %85 = vector.multi_reduction <maximumf>, %77, %cst_33 [1] : vector<1x16xf32> to vector<1xf32>
    %86 = vector.shape_cast %85 : vector<1xf32> to vector<1x1xf32>
    %87 = vector.broadcast %86 : vector<1x1xf32> to vector<1x16xf32>
    %88 = arith.cmpf oeq, %77, %87 : vector<1x16xf32>
    %c16_i32 = arith.constant 16 : i32
    %89 = vector.broadcast %c16_i32 : i32 to vector<1x16xi32>
    %90 = arith.select %88, %75, %89 : vector<1x16xi1>, vector<1x16xi32>
    %cst_34 = arith.constant dense<2147483647> : vector<1xi32>
    %91 = vector.multi_reduction <minsi>, %90, %cst_34 [1] : vector<1x16xi32> to vector<1xi32>
    %92 = vector.shape_cast %91 : vector<1xi32> to vector<1x1xi32>
    %cst_35 = arith.constant dense<0xFF800000> : vector<1xf32>
    %93 = vector.multi_reduction <maximumf>, %78, %cst_35 [1] : vector<1x16xf32> to vector<1xf32>
    %94 = vector.shape_cast %93 : vector<1xf32> to vector<1x1xf32>
    %95 = vector.broadcast %94 : vector<1x1xf32> to vector<1x16xf32>
    %96 = arith.cmpf oeq, %78, %95 : vector<1x16xf32>
    %c16_i32_36 = arith.constant 16 : i32
    %97 = vector.broadcast %c16_i32_36 : i32 to vector<1x16xi32>
    %98 = arith.select %96, %75, %97 : vector<1x16xi1>, vector<1x16xi32>
    %cst_37 = arith.constant dense<2147483647> : vector<1xi32>
    %99 = vector.multi_reduction <minsi>, %98, %cst_37 [1] : vector<1x16xi32> to vector<1xi32>
    %100 = vector.shape_cast %99 : vector<1xi32> to vector<1x1xi32>
    %101 = vector.broadcast %92 : vector<1x1xi32> to vector<1x16xi32>
    %102 = arith.cmpi eq, %75, %101 : vector<1x16xi32>
    %103 = arith.extui %102 : vector<1x16xi1> to vector<1x16xi32>
    %104 = arith.sitofp %103 : vector<1x16xi32> to vector<1x16xf32>
    %105 = vector.broadcast %100 : vector<1x1xi32> to vector<1x16xi32>
    %106 = arith.cmpi eq, %75, %105 : vector<1x16xi32>
    %107 = arith.extui %106 : vector<1x16xi1> to vector<1x16xi32>
    %108 = arith.sitofp %107 : vector<1x16xi32> to vector<1x16xf32>
    %109 = vector.extract_strided_slice %74 {offsets = [3, 0], sizes = [1, 16], strides = [1, 1]} : vector<8x32xf32> to vector<1x16xf32>
    %110 = arith.mulf %109, %104 : vector<1x16xf32>
    %cst_38 = arith.constant dense<0.000000e+00> : vector<1xf32>
    %111 = vector.multi_reduction <add>, %110, %cst_38 [1] : vector<1x16xf32> to vector<1xf32>
    %112 = vector.shape_cast %111 : vector<1xf32> to vector<1x1xf32>
    %113 = vector.extract_strided_slice %74 {offsets = [4, 0], sizes = [1, 16], strides = [1, 1]} : vector<8x32xf32> to vector<1x16xf32>
    %114 = arith.mulf %113, %108 : vector<1x16xf32>
    %cst_39 = arith.constant dense<0.000000e+00> : vector<1xf32>
    %115 = vector.multi_reduction <add>, %114, %cst_39 [1] : vector<1x16xf32> to vector<1xf32>
    %116 = vector.shape_cast %115 : vector<1xf32> to vector<1x1xf32>
    %117 = arith.addf %112, %116 : vector<1x1xf32>
    %118 = arith.negf %117 : vector<1x1xf32>
    %119 = math.exp %118 : vector<1x1xf32>
    %cst_40 = arith.constant 1.000000e+00 : f32
    %120 = vector.broadcast %cst_40 : f32 to vector<1x1xf32>
    %121 = arith.addf %120, %119 : vector<1x1xf32>
    %122 = arith.divf %120, %121 : vector<1x1xf32>
    %123 = vector.extract_strided_slice %68 {offsets = [0, 0], sizes = [1, 2], strides = [1, 1]} : vector<2x2xf32> to vector<1x2xf32>
    %124 = tpu.concatenate %123, %77, %78, %84, %122, %76 in 1 : vector<1x2xf32>, vector<1x16xf32>, vector<1x16xf32>, vector<1x1xf32>, vector<1x1xf32>, vector<1x92xf32> -> vector<1x128xf32>
    %125 = vector.extract_strided_slice %74 {offsets = [0, 16], sizes = [1, 16], strides = [1, 1]} : vector<8x32xf32> to vector<1x16xf32>
    %126 = vector.extract_strided_slice %74 {offsets = [1, 16], sizes = [1, 16], strides = [1, 1]} : vector<8x32xf32> to vector<1x16xf32>
    %127 = vector.extract_strided_slice %74 {offsets = [2, 16], sizes = [1, 1], strides = [1, 1]} : vector<8x32xf32> to vector<1x1xf32>
    %128 = arith.negf %127 : vector<1x1xf32>
    %129 = math.exp %128 : vector<1x1xf32>
    %cst_41 = arith.constant 1.000000e+00 : f32
    %130 = vector.broadcast %cst_41 : f32 to vector<1x1xf32>
    %131 = arith.addf %130, %129 : vector<1x1xf32>
    %132 = arith.divf %130, %131 : vector<1x1xf32>
    %cst_42 = arith.constant dense<0xFF800000> : vector<1xf32>
    %133 = vector.multi_reduction <maximumf>, %125, %cst_42 [1] : vector<1x16xf32> to vector<1xf32>
    %134 = vector.shape_cast %133 : vector<1xf32> to vector<1x1xf32>
    %135 = vector.broadcast %134 : vector<1x1xf32> to vector<1x16xf32>
    %136 = arith.cmpf oeq, %125, %135 : vector<1x16xf32>
    %c16_i32_43 = arith.constant 16 : i32
    %137 = vector.broadcast %c16_i32_43 : i32 to vector<1x16xi32>
    %138 = arith.select %136, %75, %137 : vector<1x16xi1>, vector<1x16xi32>
    %cst_44 = arith.constant dense<2147483647> : vector<1xi32>
    %139 = vector.multi_reduction <minsi>, %138, %cst_44 [1] : vector<1x16xi32> to vector<1xi32>
    %140 = vector.shape_cast %139 : vector<1xi32> to vector<1x1xi32>
    %cst_45 = arith.constant dense<0xFF800000> : vector<1xf32>
    %141 = vector.multi_reduction <maximumf>, %126, %cst_45 [1] : vector<1x16xf32> to vector<1xf32>
    %142 = vector.shape_cast %141 : vector<1xf32> to vector<1x1xf32>
    %143 = vector.broadcast %142 : vector<1x1xf32> to vector<1x16xf32>
    %144 = arith.cmpf oeq, %126, %143 : vector<1x16xf32>
    %c16_i32_46 = arith.constant 16 : i32
    %145 = vector.broadcast %c16_i32_46 : i32 to vector<1x16xi32>
    %146 = arith.select %144, %75, %145 : vector<1x16xi1>, vector<1x16xi32>
    %cst_47 = arith.constant dense<2147483647> : vector<1xi32>
    %147 = vector.multi_reduction <minsi>, %146, %cst_47 [1] : vector<1x16xi32> to vector<1xi32>
    %148 = vector.shape_cast %147 : vector<1xi32> to vector<1x1xi32>
    %149 = vector.broadcast %140 : vector<1x1xi32> to vector<1x16xi32>
    %150 = arith.cmpi eq, %75, %149 : vector<1x16xi32>
    %151 = arith.extui %150 : vector<1x16xi1> to vector<1x16xi32>
    %152 = arith.sitofp %151 : vector<1x16xi32> to vector<1x16xf32>
    %153 = vector.broadcast %148 : vector<1x1xi32> to vector<1x16xi32>
    %154 = arith.cmpi eq, %75, %153 : vector<1x16xi32>
    %155 = arith.extui %154 : vector<1x16xi1> to vector<1x16xi32>
    %156 = arith.sitofp %155 : vector<1x16xi32> to vector<1x16xf32>
    %157 = vector.extract_strided_slice %74 {offsets = [3, 16], sizes = [1, 16], strides = [1, 1]} : vector<8x32xf32> to vector<1x16xf32>
    %158 = arith.mulf %157, %152 : vector<1x16xf32>
    %cst_48 = arith.constant dense<0.000000e+00> : vector<1xf32>
    %159 = vector.multi_reduction <add>, %158, %cst_48 [1] : vector<1x16xf32> to vector<1xf32>
    %160 = vector.shape_cast %159 : vector<1xf32> to vector<1x1xf32>
    %161 = vector.extract_strided_slice %74 {offsets = [4, 16], sizes = [1, 16], strides = [1, 1]} : vector<8x32xf32> to vector<1x16xf32>
    %162 = arith.mulf %161, %156 : vector<1x16xf32>
    %cst_49 = arith.constant dense<0.000000e+00> : vector<1xf32>
    %163 = vector.multi_reduction <add>, %162, %cst_49 [1] : vector<1x16xf32> to vector<1xf32>
    %164 = vector.shape_cast %163 : vector<1xf32> to vector<1x1xf32>
    %165 = arith.addf %160, %164 : vector<1x1xf32>
    %166 = arith.negf %165 : vector<1x1xf32>
    %167 = math.exp %166 : vector<1x1xf32>
    %cst_50 = arith.constant 1.000000e+00 : f32
    %168 = vector.broadcast %cst_50 : f32 to vector<1x1xf32>
    %169 = arith.addf %168, %167 : vector<1x1xf32>
    %170 = arith.divf %168, %169 : vector<1x1xf32>
    %171 = vector.extract_strided_slice %68 {offsets = [1, 0], sizes = [1, 2], strides = [1, 1]} : vector<2x2xf32> to vector<1x2xf32>
    %172 = tpu.concatenate %171, %125, %126, %132, %170, %76 in 1 : vector<1x2xf32>, vector<1x16xf32>, vector<1x16xf32>, vector<1x1xf32>, vector<1x1xf32>, vector<1x92xf32> -> vector<1x128xf32>
    %173 = tpu.concatenate %124, %172 in 0 : vector<1x128xf32>, vector<1x128xf32> -> vector<2x128xf32>
    %c0_51 = arith.constant 0 : index
    %c0_52 = arith.constant 0 : index
    %174 = vector.load %arg9[%c0_51, %c0_52] : memref<2x128xf32, #tpu.memory_space<vmem>>, vector<2x128xf32>
    tpu.vector_store %arg9[%c0_51, %c0_52], %173 {strides = array<i32>} : memref<2x128xf32, #tpu.memory_space<vmem>>, vector<2x128xf32>,
    return
  }
}

</mosaic_0001>

<bundles_post_ra>
// kernel: medical_qa_forward.1
= control target key start
LH: loop header
LB: loop body
LE: loop exit
PB: predicated region body
PF: predicated region fallthrough
CT: control target
= control target key end

     0   :  { %14 = vsyncpa [#allocation3], 0  ;;  %s3957_s0 = inlined_call_operand.vmem [shape: f32[32,128], index: 0, kind: input, shape index: {}]   ;;  %s3958_s1 = inlined_call_operand.vmem [shape: f32[32,32], index: 1, kind: input, shape index: {}]   ;;  %s3959_s2 = inlined_call_operand.hbm [shape: bf16[6,128,768], index: 2, kind: input, shape index: {}]   ;;  %s3960_s3 = inlined_call_operand.hbm [shape: bf16[6,256,128], index: 3, kind: input, shape index: {}]   ;;  %s3961_s4 = inlined_call_operand.hbm [shape: f32[6,1,1408], index: 4, kind: input, shape index: {}]   ;;  %s3962_s5 = inlined_call_operand.hbm [shape: f32[6,128], index: 5, kind: input, shape index: {}]   ;;  %s3963_s6 = inlined_call_operand.vmem [shape: bf16[192,64], index: 6, kind: input, shape index: {}]   ;;  %s3964_s7 = inlined_call_operand.hbm [shape: bf16[8,128], index: 7, kind: input, shape index: {}]   ;;  %s3965_s8 = inlined_call_operand.vmem [shape: f32[8,1], index: 8, kind: input, shape index: {}]   ;;  %s3966_s9 = inlined_call_operand.vmem [shape: f32[2,128], index: 9, kind: output, shape index: {}]  }
   0x1   :  { %15 = vsyncpa [#allocation5], 0 }
   0x2   :  { %16 = vsyncpa [#allocation8], 0  ;;  %s3371_s30 = smov [#allocation4]  }
   0x3   :  { %s38_s10 = sshll.u32 %s3371_s30, 4  ;;  %s39_s10 = int_to_ptr.vmem [resolvable:$true] %s38_s10 }
   0x4   :  { %s3233_s11 = scalar_lea.vmem %s39_s10, 12288  ;;  %p3238_p1 = scmp.lt.s32.totalorder %s39_s10, %s39_s10 }
   0x5   :  { %p3234_p0 = scmp.ne.s32.totalorder %s39_s10, %s3233_s11  ;;  %p3239_p2 = scmp.lt.s32.totalorder %s3233_s11, %s3233_s11 }
   0x7   :  { %p3240_p3 = por %p3239_p2, %p3238_p1 }
   0x9   :  { %p3241_p4 = pnand %p3240_p3, %p3234_p0 }
   0xb   :  { %3244 = shalt.err (!%p3241_p4)
}
   0xc   :  { %s3372_s12 = smov 64   ;;  %s3373_s13 = smov 4  }
   0xd   :  { %44 = dma.hbm_to_vmem [thread:$0]  %s3960_s3, 12288, %s39_s10, [#allocation5], %s3372_s12, %s3372_s12, %s3373_s13  }
   0xe   :  { %s3374_s16 = smov [#allocation7]   ;;  %s3375_s18 = smov [#allocation2]  }
   0xf   :  { %s63_s17 = sshll.u32 %s3374_s16, 4  ;;  %s26_s19 = sshll.u32 %s3375_s18, 4  ;;  %s64_s17 = int_to_ptr.vmem [resolvable:$true] %s63_s17  ;;  %s27_s19 = int_to_ptr.vmem [resolvable:$true] %s26_s19 }
  0x10   :  { %s3253_s20 = scalar_lea.vmem %s64_s17, 128  ;;  %p3258_p6 = scmp.lt.s32.totalorder %s64_s17, %s64_s17 }
  0x11   :  { %p3254_p5 = scmp.ne.s32.totalorder %s64_s17, %s3253_s20  ;;  %p3259_p7 = scmp.lt.s32.totalorder %s3253_s20, %s3253_s20 }
  0x13   :  { %p3260_p8 = por %p3259_p7, %p3258_p6 }
  0x15   :  { %p3261_p9 = pnand %p3260_p8, %p3254_p5 }
  0x17   :  { %3264 = shalt.err (!%p3261_p9)
}
  0x18   :  { %66 = dma.hbm_to_vmem [thread:$0]  %s3962_s5, 128, %s64_s17, [#allocation8]  }
  0x19   :  { %s3273_s23 = scalar_lea.vmem %s27_s19, 36864  ;;  %p3278_p11 = scmp.lt.s32.totalorder %s27_s19, %s27_s19 }
  0x1a   :  { %p3274_p10 = scmp.ne.s32.totalorder %s27_s19, %s3273_s23  ;;  %p3279_p12 = scmp.lt.s32.totalorder %s3273_s23, %s3273_s23 }
  0x1c   :  { %p3280_p13 = por %p3279_p12, %p3278_p11 }
  0x1e   :  { %p3281_p0 = pnand %p3280_p13, %p3274_p10 }
  0x20   :  { %3284 = shalt.err (!%p3281_p0)
}
  0x21   :  { %s3376_s3 = smov 384   ;;  %s3377_s24 = smov 24  }
  0x22   :  { %32 = dma.hbm_to_vmem [thread:$0]  %s3959_s2, 36864, %s27_s19, [#allocation3], %s3376_s3, %s3376_s3, %s3377_s24  }
  0x23   :  { %s3378_s27 = smov [#allocation6]  }
  0x24   :  { %s50_s28 = sshll.u32 %s3378_s27, 4  ;;  %s51_s28 = int_to_ptr.vmem [resolvable:$true] %s50_s28 }
  0x25   :  { %s3293_s29 = scalar_lea.vmem %s51_s28, 1056  ;;  %p3298_p2 = scmp.lt.s32.totalorder %s51_s28, %s51_s28 }
  0x26   :  { %p3294_p1 = scmp.ne.s32.totalorder %s51_s28, %s3293_s29  ;;  %p3299_p3 = scmp.lt.s32.totalorder %s3293_s29, %s3293_s29 }
  0x28   :  { %p3300_p4 = por %p3299_p3, %p3298_p2 }
  0x2a   :  { %p3301_p5 = pnand %p3300_p4, %p3294_p1 }
  0x2c   :  { %3304 = shalt.err (!%p3301_p5)
}
  0x2d   :  { %s3379_s5 = smov 176   ;;  %s3380_s30 = smov 11  }
  0x2e   :  { %56 = dma.hbm_to_vmem [thread:$0]  %s3961_s4, 1056, %s51_s28, [#allocation5], %s3379_s5, %s3379_s5, %s3380_s30  }
  0x2f   :  { %s3381_s12 = smov [#allocation9]  }
  0x30   :  { %s75_s13 = sshll.u32 %s3381_s12, 4  ;;  %s76_s13 = int_to_ptr.vmem [resolvable:$true] %s75_s13 }
  0x31   :  { %s3313_s2 = scalar_lea.vmem %s76_s13, 64  ;;  %p3318_p7 = scmp.lt.s32.totalorder %s76_s13, %s76_s13 }
  0x32   :  { %p3314_p6 = scmp.ne.s32.totalorder %s76_s13, %s3313_s2  ;;  %p3319_p8 = scmp.lt.s32.totalorder %s3313_s2, %s3313_s2 }
  0x34   :  { %p3320_p9 = por %p3319_p8, %p3318_p7 }
  0x36   :  { %p3321_p10 = pnand %p3320_p9, %p3314_p6 }
  0x38   :  { %3324 = shalt.err (!%p3321_p10)
}
  0x39   :  { %78 = dma.hbm_to_vmem [thread:$0]  %s3964_s7, 64, %s76_s13, [#allocation8]  }
  0x3a   :  { %3345 = dma.done.wait [#allocation3], 36864  }
  0x3b   :  { %3346 = vsyncadd [#allocation3], 4294930432 }
  0x3c   :  { %3347 = dma.done.wait [#allocation5], 13344  }
  0x3d   :  { %3348 = vsyncadd [#allocation5], 4294953952 }
  0x3e   :  { %3349 = dma.done.wait [#allocation8], 192  }
  0x3f   :  { %3350 = vsyncadd [#allocation8], 4294967104  ;;  %v3464_v0 = vld [vmem:[%s3958_s1] sm:$0xff]  ;;  %v3469_v1 = vld [vmem:[%s3958_s1 + $0x8] sm:$0xff] }
  0x40   :  { %v3474_v2 = vld [vmem:[%s3958_s1 + $0x10] sm:$0xff]  ;;  %v3479_v3 = vld [vmem:[%s3958_s1 + $0x18] sm:$0xff]  ;;  %v101_v4 = vld [vmem:[%s3957_s0] sm:$0xff] }
  0x41   :  { %v103_v5 = vld [vmem:[%s3957_s0 + $0x10] sm:$0xff]  ;;  %107 = vadd.xlane.f32.xlu0 %v101_v4  ;;  %v102_v6 = vld [vmem:[%s3957_s0 + $0x8] sm:$0xff]  ;;  %v104_v7 = vld [vmem:[%s3957_s0 + $0x18] sm:$0xff]  ;;  %s3501_s0 = smov 0  }
  0x42   :  { %111 = vadd.xlane.f32.xlu1 %v103_v5  ;;  %v2567_v37 = vld [vmem:[#allocation7] ss:$0 sm:$0xff]  ;;  %v2568_v39 = vld [vmem:[#allocation7 + $0x1] ss:$0 sm:$0xff] }
  0x45   :  { %109 = vadd.xlane.f32.xlu0 %v102_v6 }
  0x46   :  { %113 = vadd.xlane.f32.xlu1 %v104_v7 }
  0xca   :  { %v108_v8 = vpop.xlane.xlu0 %107 }
  0xcb   :  { %v112_v9 = vpop.xlane.xlu1 %111  ;;  %v116_v10 = vmul.f32 0.0078125, %v108_v8 }
  0xcc   :  { %v118_v11 = vmul.f32 0.0078125, %v112_v9 }
  0xcd   :  { %v120_v12 = vsub.f32 %v101_v4, %v116_v10 }
  0xce   :  { %v122_v13 = vsub.f32 %v103_v5, %v118_v11  ;;  %v110_v14 = vpop.xlane.xlu0 %109 }
  0xcf   :  { %v114_v15 = vpop.xlane.xlu1 %113  ;;  %v117_v16 = vmul.f32 0.0078125, %v110_v14  ;;  %v124_v17 = vmul.f32 %v120_v12, %v120_v12 }
  0xd0   :  { %v119_v18 = vmul.f32 0.0078125, %v114_v15  ;;  %v126_v21 = vmul.f32 %v122_v13, %v122_v13 }
  0xd1   :  { %v121_v19 = vsub.f32 %v102_v6, %v117_v16  ;;  %128 = vadd.xlane.f32.xlu0 %v124_v17 }
  0xd2   :  { %v123_v20 = vsub.f32 %v104_v7, %v119_v18 }
  0xd3   :  { %v125_v22 = vmul.f32 %v121_v19, %v121_v19 }
  0xd4   :  { %v127_v23 = vmul.f32 %v123_v20, %v123_v20 }
  0xd5   :  { %132 = vadd.xlane.f32.xlu0 %v126_v21  ;;  %130 = vadd.xlane.f32.xlu1 %v125_v22 }
  0xd9   :  { %134 = vadd.xlane.f32.xlu1 %v127_v23 }
 0x15a   :  { %v129_v24 = vpop.xlane.xlu0 %128 }
 0x15b   :  { %v136_v25 = vmul.f32 0.0078125, %v129_v24 }
 0x15d   :  { %v140_v26 = vadd.f32 1e-12, %v136_v25 }
 0x15e   :  { %v131_v27 = vpop.xlane.xlu1 %130  ;;  %v133_v28 = vpop.xlane.xlu0 %132 }
 0x15f   :  { %3024 = vrsqrt.f32 %v140_v26  ;;  %v137_v29 = vmul.f32 0.0078125, %v131_v27  ;;  %v138_v30 = vmul.f32 0.0078125, %v133_v28 }
 0x161   :  { %v141_v31 = vadd.f32 1e-12, %v137_v29  ;;  %v142_v32 = vadd.f32 1e-12, %v138_v30 }
 0x162   :  { %v135_v33 = vpop.xlane.xlu1 %134 }
 0x163   :  { %3026 = vrsqrt.f32 %v141_v31  ;;  %v139_v34 = vmul.f32 0.0078125, %v135_v33 }
 0x164   :  { %3028 = vrsqrt.f32 %v142_v32 }
 0x165   :  { %v143_v35 = vadd.f32 1e-12, %v139_v34 }
 0x167   :  { %3030 = vrsqrt.f32 %v143_v35 }
 0x16c   :  { %v3025_v36 = vpop.eup %3024 }
 0x16d   :  { %v148_v38 = vmul.f32 %v3025_v36, %v120_v12 }
 0x16f   :  { %v156_v40 = vmul.f32 %v2567_v37, %v148_v38 }
 0x170   :  { %v3027_v41 = vpop.eup %3026 }
 0x171   :  { %v3029_v42 = vpop.eup %3028  ;;  %v164_v43 = vadd.f32 %v2568_v39, %v156_v40   ;;  %v149_v44 = vmul.f32 %v3027_v41, %v121_v19 }
 0x172   :  { %v150_v45 = vmul.f32 %v3029_v42, %v122_v13 }
 0x173   :  { %v157_v46 = vmul.f32 %v2567_v37, %v149_v44 }
 0x174   :  { %v3031_v47 = vpop.eup %3030  ;;  %v158_v48 = vmul.f32 %v2567_v37, %v150_v45 }
 0x175   :  { %v165_v49 = vadd.f32 %v2568_v39, %v157_v46   ;;  %v151_v50 = vmul.f32 %v3031_v47, %v123_v20 }
 0x176   :  { %v166_v51 = vadd.f32 %v2568_v39, %v158_v48  }
 0x177   :  { %v159_v52 = vmul.f32 %v2567_v37, %v151_v50 }
 0x179   :  { %v167_v53 = vadd.f32 %v2568_v39, %v159_v52  }
 0x17a LB: > { %v3382_v54 = vmov 0   ;;  %s2690_s1 = smul.u32 384, %s3369_s0  ;;  %v223_v55 = vpack.c.bf16 %v3361_v49, %v3365_v43  ;;  %v3543_v12 = vpack.c.bf16 %v3353_v53, %v3357_v51  ;;  %v226_v13 = vlaneseq  ;;  %s3383_s10 = smov 96   ;;  %s3369_s0 = sphi %s3501_s0, %s173_s0   ;;  %v3365_v43 = vphi %v164_v43, %v3971_v43   ;;  %v3361_v49 = vphi %v165_v49, %v3970_v49   ;;  %v3357_v51 = vphi %v166_v51, %v3969_v51   ;;  %v3353_v53 = vphi %v167_v53, %v3968_v53  }
 0x17b   : > { %401 = vmatprep.mubr.bf16.mxu0 %v3382_v54  ;;  %s178_s5 = smul.u32 11, %s3369_s0  ;;  %vm477_vm0 = vcmask 261120   ;;  %s3384_s11 = smov 64  }
 0x17c   : > { %2811 = vmatprep.mubr.bf16.mxu1 %v223_v55  ;;  %s3522_s29 = scalar_lea.vmem [#allocation2], %s2690_s1  ;;  %v3548_v14 = vshrl.u32 %v226_v13, 7  ;;  %s3385_s12 = smov 32  }
 0x17d   : > { %v3032_v56 = vld [vmem:[%s3522_s29 + $0x154] ss:$24 sps:$4 sm:$0xff]   ;;  %v3034_v57 = vld [vmem:[%s3522_s29 + $0x150] ss:$24 sps:$4 sm:$0xff]   ;;  %v3035_v58 = vld [vmem:[%s3522_s29 + $0x124] ss:$24 sps:$4 sm:$0xff]  }
 0x17e   : > { %369 = vmatprep.subr.bf16.mxu0 %v3032_v56  ;;  %v3037_v59 = vld [vmem:[%s3522_s29 + $0x120] ss:$24 sps:$4 sm:$0xff]   ;;  %v3038_v60 = vld [vmem:[%s3522_s29 + $0xf4] ss:$24 sps:$4 sm:$0xff]   ;;  %v3040_v61 = vld [vmem:[%s3522_s29 + $0xf0] ss:$24 sps:$4 sm:$0xff]  }
 0x17f   : > { %370 = vmatpush1.bf16.msra.mxu0 %v3034_v57  ;;  %v3041_v62 = vld [vmem:[%s3522_s29 + $0xc4] ss:$24 sps:$4 sm:$0xff]   ;;  %v3043_v63 = vld [vmem:[%s3522_s29 + $0xc0] ss:$24 sps:$4 sm:$0xff]   ;;  %v3044_v4 = vld [vmem:[%s3522_s29 + $0x94] ss:$24 sps:$4 sm:$0xff]  }
 0x180   : > { %371 = vmatprep.subr.bf16.mxu0 %v3035_v58  ;;  %v3046_v5 = vld [vmem:[%s3522_s29 + $0x90] ss:$24 sps:$4 sm:$0xff]   ;;  %v3047_v6 = vld [vmem:[%s3522_s29 + $0x64] ss:$24 sps:$4 sm:$0xff]   ;;  %v3049_v7 = vld [vmem:[%s3522_s29 + $0x60] ss:$24 sps:$4 sm:$0xff]  }
 0x181   : > { %v3050_v8 = vld [vmem:[%s3522_s29 + $0x34] ss:$24 sps:$4 sm:$0xff]   ;;  %v3052_v9 = vld [vmem:[%s3522_s29 + $0x30] ss:$24 sps:$4 sm:$0xff]   ;;  %v3053_v10 = vld [vmem:[%s3522_s29 + $0x4] ss:$24 sps:$4 sm:$0xff]  }
 0x182   : > { %v3055_v11 = vld [vmem:[%s3522_s29] ss:$24 sps:$4 sm:$0xff]   ;;  %v228_v15 = vsub.s32 0, %v3548_v14  ;;  %s3551_s30 = scalar_lea.vmem [#allocation6], %s178_s5  ;;  %v232_v26 = vsub.s32 1, %v3548_v14  ;;  %s2691_s13 = sshll.u32 %s3369_s0, 7 }
 0x183   : > { %372 = vmatpush1.bf16.msra.mxu0 %v3037_v59  ;;  %v3554_v16 = vld [vmem:[%s3551_s30] sm:$0x7]  ;;  %v3056_v42 = vld [vmem:[%s3522_s29 + $0x158] ss:$24 sps:$4 sm:$0xff]   ;;  %s3779_s2 = scalar_lea.vmem [#allocation4], %s2691_s13  ;;  %s173_s0 = sadd.s32 1, %s3369_s0  }
 0x184   : > { %373 = vmatprep.subr.bf16.mxu0 %v3038_v60  ;;  %v229_v18 = vrot.slane %v3554_v16, %v228_v15  ;;  %v233_v29 = vrot.slane %v3554_v16, %v232_v26  ;;  %v3057_v44 = vld [vmem:[%s3522_s29 + $0x128] ss:$24 sps:$4 sm:$0xff]   ;;  %2795 = vmatprep.subr.bf16.mxu1 %v3056_v42  ;;  %v3058_v45 = vld [vmem:[%s3522_s29 + $0xf8] ss:$24 sps:$4 sm:$0xff]   ;;  %p170_p11 = scmp.ge.s32.totalorder %s173_s0, 6  }
 0x185   : > { %2796 = vmatpush3.bf16.msra.mxu1 %v3056_v42  ;;  %v3059_v46 = vld [vmem:[%s3522_s29 + $0xc8] ss:$24 sps:$4 sm:$0xff]   ;;  %v3060_v47 = vld [vmem:[%s3522_s29 + $0x98] ss:$24 sps:$4 sm:$0xff]   ;;  %vm3387_vm1 = vmmov (%p170_p11), 0   ;;  %vm2077_vm2 = vcmask (%p170_p11), 1040384  }
 0x186   : > { %2797 = vmatprep.subr.bf16.mxu1 %v3057_v44  ;;  %v3061_v48 = vld [vmem:[%s3522_s29 + $0x68] ss:$24 sps:$4 sm:$0xff]   ;;  %v3062_v50 = vld [vmem:[%s3522_s29 + $0x38] ss:$24 sps:$4 sm:$0xff]   ;;  %vm2228_vm3 = vcmask (%p170_p11), 523264   ;;  %vm2454_vm4 = vcmask (%p170_p11), 255105  }
 0x187   : > { %374 = vmatpush1.bf16.msra.mxu0 %v3040_v61  ;;  %v3063_v52 = vld [vmem:[%s3522_s29 + $0x8] ss:$24 sps:$4 sm:$0xff]   ;;  %vm2431_vm5 = vcmask (%p170_p11), 254080   ;;  %vm2350_vm8 = vcmask (%p170_p11), 123905   ;;  %vm2329_vm9 = vcmask (%p170_p11), 122880   ;;  %s3391_s13 = smov (%p170_p11), 114  }
 0x188   : > { %375 = vmatprep.subr.bf16.mxu0 %v3041_v62  ;;  %s3393_s14 = smov (%p170_p11), 2   ;;  %s3394_s15 = smov (%p170_p11), 34  }
 0x189   : > { %2798 = vmatpush3.bf16.msra.mxu1 %v3057_v44  ;;  %s3395_s4 = smov (%p170_p11), 35  }
 0x18a   : > { %2799 = vmatprep.subr.bf16.mxu1 %v3058_v45 }
 0x18b   : > { %376 = vmatpush1.bf16.msra.mxu0 %v3043_v63 }
 0x18c   : > { %377 = vmatprep.subr.bf16.mxu0 %v3044_v4 }
 0x18d   : > { %2800 = vmatpush3.bf16.msra.mxu1 %v3058_v45 }
 0x18e   : > { %2801 = vmatprep.subr.bf16.mxu1 %v3059_v46 }
 0x18f   : > { %378 = vmatpush1.bf16.msra.mxu0 %v3046_v5 }
 0x190   : > { %379 = vmatprep.subr.bf16.mxu0 %v3047_v6 }
 0x191   : > { %2802 = vmatpush3.bf16.msra.mxu1 %v3059_v46 }
 0x192   : > { %2803 = vmatprep.subr.bf16.mxu1 %v3060_v47 }
 0x193   : > { %380 = vmatpush1.bf16.msra.mxu0 %v3049_v7 }
 0x194   : > { %381 = vmatprep.subr.bf16.mxu0 %v3050_v8 }
 0x195   : > { %2804 = vmatpush3.bf16.msra.mxu1 %v3060_v47 }
 0x196   : > { %2805 = vmatprep.subr.bf16.mxu1 %v3061_v48 }
 0x197   : > { %382 = vmatpush1.bf16.msra.mxu0 %v3052_v9 }
 0x198   : > { %383 = vmatprep.subr.bf16.mxu0 %v3053_v10 }
 0x199   : > { %2806 = vmatpush3.bf16.msra.mxu1 %v3061_v48 }
 0x19a   : > { %2807 = vmatprep.subr.bf16.mxu1 %v3062_v50 }
 0x19b   : > { %384 = vmatpush1.bf16.msra.mxu0 %v3055_v11  ;;  %v236_v11 = vsub.s32 2, %v3548_v14 }
 0x19d   : > { %2808 = vmatpush3.bf16.msra.mxu1 %v3062_v50 }
 0x19e   : > { %402 = vmatmul.mubr.bf16.vlgmr.msra.gmra.mxu0 %v223_v55  ;;  %2809 = vmatprep.subr.bf16.mxu1 %v3063_v52 }
 0x19f   : > { %411 = vmatprep.mubr.bf16.mxu0 %v3382_v54 }
 0x1a1   : > { %2810 = vmatpush3.bf16.msra.mxu1 %v3063_v52 }
 0x1a4   : > { %2812 = vmatmul.mubr.bf16.vlgmr.msra.gmra.mxu1 %v3543_v12 }
 0x1a6   : > { %412 = vmatmul.mubr.bf16.gmra.mxu0 %v3543_v12  ;;  %v237_v12 = vrot.slane %v3554_v16, %v236_v11 }
 0x25e   : > { %v403_v17 = vpop.f32.mrf.mxu0 }
 0x25f   : > { %v404_v21 = vadd.f32 %v403_v17, %v229_v18 }
 0x260   : > { %v405_v19 = vpop.f32.mrf.mxu0 }
 0x261   : > { %v406_v34 = vadd.f32 %v405_v19, %v233_v29 }
 0x262   : > { %v407_v20 = vpop.f32.mrf.mxu0 }
 0x263   : > { %v408_v22 = vadd.f32 %v407_v20, %v229_v18 }
 0x264   : > { %v409_v23 = vpop.f32.mrf.mxu0  ;;  %v2813_v17 = vpop.f32.mrf.mxu1 }
 0x265   : > { %v3559_v24 = vpack.c.bf16 %v408_v22, %v404_v21  ;;  %v410_v31 = vadd.f32 %v409_v23, %v233_v29  ;;  %v465_v19 = vadd.f32 %v2813_v17, %v237_v12 }
 0x266   : > { %v413_v25 = vpop.f32.mrf.mxu0 }
 0x267   : > { %2819 = vmatprep.mubr.msk.bf16.mxu0 %vm477_vm0, %v3559_v24  ;;  %v3569_v36 = vpack.c.bf16 %v410_v31, %v406_v34  ;;  %v414_v40 = vadd.f32 %v413_v25, %v229_v18 }
 0x268   : > { %v415_v27 = vpop.f32.mrf.mxu0 }
 0x269   : > { %v416_v32 = vadd.f32 %v415_v27, %v233_v29  ;;  %v485_v38 = vsel %vm477_vm0, %v3569_v36, 0 }
 0x26a   : > { %v417_v28 = vpop.f32.mrf.mxu0 }
 0x26b   : > { %v418_v39 = vadd.f32 %v417_v28, %v229_v18  ;;  %v456_v18 = vpop.f32.mrf.mxu1 }
 0x26c   : > { %v419_v30 = vpop.f32.mrf.mxu0  ;;  %v457_v48 = vadd.f32 %v456_v18, %v237_v12 }
 0x26d   : > { %v420_v33 = vadd.f32 %v419_v30, %v233_v29  ;;  %v3579_v41 = vpack.c.bf16 %v418_v39, %v414_v40  ;;  %v2814_v20 = vpop.f32.mrf.mxu1 }
 0x26e   : > { %v468_v21 = vadd.f32 %v2814_v20, %v237_v12  ;;  %v3064_v20 = vld [vmem:[%s3522_s29 + $0x3c] ss:$24 sps:$4 sm:$0xff]  }
 0x26f   : > { %v3567_v35 = vpack.c.bf16 %v420_v33, %v416_v32  ;;  %v459_v50 = vpop.f32.mrf.mxu1 }
 0x270   : > { %v3602_v22 = vpack.c.bf16 %v468_v21, %v465_v19  ;;  %v460_v52 = vadd.f32 %v459_v50, %v237_v12  ;;  %v3065_v21 = vld [vmem:[%s3522_s29 + $0xc] ss:$24 sps:$4 sm:$0xff]  }
 0x271   : > { %2951 = vmatprep.subr.msk.bf16.mxu0 %vm477_vm0, %v3567_v35  ;;  %v488_v37 = vsel %vm477_vm0, %v3567_v35, 0 }
 0x272   : > { %2816 = vmatpush3.bf16.xpose.msra.mxu0 %v488_v37  ;;  %2823 = vmatprep.subr.bf16.mxu1 %v3602_v22 }
 0x273   : > { %2952 = vmatprep.subr.msk.bf16.mxu0 %vm477_vm0, %v3569_v36  ;;  %2824 = vmatpush3.bf16.msra.mxu1 %v3602_v22 }
 0x27a   : > { %2818 = vmatpush3.bf16.xpose.msra.mxu0 %v485_v38 }
 0x281   : > { %2820 = vmatmul.mubr.msk.bf16.vlgmr.msra.gmra.mxu0 %vm477_vm0, %v3579_v41 }
 0x341   : > { %v2821_v55 = vpop.f32.mrf.mxu0 }
 0x342   : > { %v541_v56 = vmul.f32 0.17677669, %v2821_v55  ;;  %v3610_v55 = vpack.c.bf16 %v460_v52, %v457_v48 }
 0x343   : > { %v524_v57 = vpop.f32.mrf.mxu0 }
 0x344   : > { %v545_v58 = vadd.f32 %v541_v56, %v3474_v2  ;;  %v539_v59 = vmul.f32 0.17677669, %v524_v57  ;;  %2825 = vmatprep.subr.bf16.mxu1 %v3610_v55 }
 0x345   : > { %v2822_v60 = vpop.f32.mrf.mxu0  ;;  %2826 = vmatpush3.bf16.msra.mxu1 %v3610_v55 }
 0x346   : > { %v543_v61 = vadd.f32 %v539_v59, %v3464_v0  ;;  %v542_v62 = vmul.f32 0.17677669, %v2822_v60  ;;  %v553_v63 = vsel %vm477_vm0, %v545_v58, -inf }
 0x347   : > { %554 = vmax.xlane.f32.xlu1 %v553_v63  ;;  %v527_v4 = vpop.f32.mrf.mxu0 }
 0x348   : > { %v546_v5 = vadd.f32 %v542_v62, %v3479_v3  ;;  %v540_v6 = vmul.f32 0.17677669, %v527_v4  ;;  %v547_v7 = vsel %vm477_vm0, %v543_v61, -inf }
 0x349   : > { %548 = vmax.xlane.f32.xlu0 %v547_v7 }
 0x34a   : > { %v544_v8 = vadd.f32 %v540_v6, %v3469_v1  ;;  %v556_v9 = vsel %vm477_vm0, %v546_v5, -inf }
 0x34b   : > { %557 = vmax.xlane.f32.xlu1 %v556_v9 }
 0x34c   : > { %v550_v10 = vsel %vm477_vm0, %v544_v8, -inf }
 0x34d   : > { %551 = vmax.xlane.f32.xlu0 %v550_v10 }
 0x3d0   : > { %v555_v23 = vpop.xlane.xlu1 %554 }
 0x3d1   : > { %v561_v25 = vsub.f32 %v545_v58, %v555_v23 }
 0x3d2   : > { %v549_v27 = vpop.xlane.xlu0 %548 }
 0x3d3   : > { %v567_v28 = vmul.f32 1.442695, %v561_v25  ;;  %v559_v29 = vsub.f32 %v543_v61, %v549_v27 }
 0x3d4   : > { %v558_v30 = vpop.xlane.xlu1 %557 }
 0x3d5   : > { %3112 = vpow2.f32 %v567_v28  ;;  %v563_v31 = vmul.f32 1.442695, %v559_v29  ;;  %v562_v16 = vsub.f32 %v546_v5, %v558_v30 }
 0x3d6   : > { %v552_v32 = vpop.xlane.xlu0 %551 }
 0x3d7   : > { %3114 = vpow2.f32 %v563_v31  ;;  %v560_v33 = vsub.f32 %v544_v8, %v552_v32  ;;  %v569_v34 = vmul.f32 1.442695, %v562_v16 }
 0x3d9   : > { %v565_v37 = vmul.f32 1.442695, %v560_v33 }
 0x3db   : > { %3116 = vpow2.f32 %v565_v37 }
 0x3dc   : > { %3118 = vpow2.f32 %v569_v34 }
 0x3e2   : > { %v3113_v38 = vpop.eup %3112 }
 0x3e3   : > { %v577_v39 = vsel %vm477_vm0, %v3113_v38, 0.0 }
 0x3e4   : > { %v3115_v40 = vpop.eup %3114  ;;  %578 = vadd.xlane.f32.xlu0 %v577_v39 }
 0x3e5   : > { %v571_v42 = vsel %vm477_vm0, %v3115_v40, 0.0 }
 0x3e8   : > { %v3117_v44 = vpop.eup %3116  ;;  %572 = vadd.xlane.f32.xlu0 %v571_v42 }
 0x3e9   : > { %v574_v45 = vsel %vm477_vm0, %v3117_v44, 0.0  ;;  %v3119_v46 = vpop.eup %3118 }
 0x3ea   : > { %575 = vadd.xlane.f32.xlu1 %v574_v45  ;;  %v580_v47 = vsel %vm477_vm0, %v3119_v46, 0.0 }
 0x3ee   : > { %581 = vadd.xlane.f32.xlu1 %v580_v47 }
 0x3fe   : > { %664 = vrot.lane.b32.xlu0 %v3567_v35, %s3383_s10 }
 0x3ff   : > { %662 = vrot.lane.b32.xlu1 %v3569_v36, %s3383_s10 }
 0x403   : > { %656 = vrot.lane.b32.xlu1 %v3559_v24, %s3383_s10 }
 0x407   : > { %658 = vrot.lane.b32.xlu1 %v3579_v41, %s3383_s10 }
 0x46d   : > { %v579_v56 = vpop.xlane.xlu0 %578 }
 0x471   : > { %v573_v57 = vpop.xlane.xlu0 %572 }
 0x472   : > { %3120 = vrcp.f32 %v573_v57 }
 0x473   : > { %v576_v58 = vpop.xlane.xlu1 %575 }
 0x474   : > { %3122 = vrcp.f32 %v576_v58 }
 0x475   : > { %v665_v59 = vpop.permute.xlu0 %664  ;;  %3124 = vrcp.f32 %v579_v56 }
 0x476   : > { %2953 = vmatprep.subr.msk.bf16.mxu1 %vm477_vm0, %v665_v59  ;;  %v676_v12 = vsel %vm477_vm0, %v665_v59, 0 }
 0x477   : > { %v582_v60 = vpop.xlane.xlu1 %581 }
 0x478   : > { %3126 = vrcp.f32 %v582_v60 }
 0x47b   : > { %v663_v6 = vpop.permute.xlu1 %662 }
 0x47c   : > { %v673_v18 = vsel %vm477_vm0, %v663_v6, 0 }
 0x47f   : > { %v3121_v61 = vpop.eup %3120  ;;  %v657_v17 = vpop.permute.xlu1 %656 }
 0x480   : > { %v587_v63 = vmul.f32 %v3121_v61, %v3115_v40 }
 0x481   : > { %v3123_v62 = vpop.eup %3122 }
 0x482   : > { %v588_v4 = vmul.f32 %v3123_v62, %v3117_v44  ;;  %v3125_v5 = vpop.eup %3124 }
 0x483   : > { %v589_v9 = vmul.f32 %v3125_v5, %v3113_v38  ;;  %v659_v19 = vpop.permute.xlu1 %658 }
 0x484   : > { %v591_v7 = vpack.c.bf16 %v588_v4, %v587_v63 }
 0x485   : > { %v3127_v8 = vpop.eup %3126 }
 0x486   : > { %2827 = vmatprep.mubr.msk.bf16.mxu1 %vm477_vm0, %v591_v7  ;;  %v590_v10 = vmul.f32 %v3127_v8, %v3119_v46 }
 0x488   : > { %v592_v11 = vpack.c.bf16 %v590_v10, %v589_v9 }
 0x48a   : > { %2828 = vmatmul.mubr.msk.bf16.vlgmr.msra.gmra.mxu1 %vm477_vm0, %v592_v11 }
 0x48b   : > { %2832 = vmatpush3.bf16.xpose.msra.mxu1 %v676_v12  ;;  %2835 = vmatprep.mubr.msk.bf16.mxu1 %vm477_vm0, %v657_v17 }
 0x48c   : > { %2954 = vmatprep.subr.msk.bf16.mxu1 %vm477_vm0, %v663_v6 }
 0x493   : > { %2834 = vmatpush3.bf16.xpose.msra.mxu1 %v673_v18 }
 0x494   : > { %2855 = vmatprep.subr.bf16.mxu1 %v3064_v20 }
 0x49a   : > { %2836 = vmatmul.mubr.msk.bf16.vlgmr.msra.gmra.mxu1 %vm477_vm0, %v659_v19 }
 0x49b   : > { %2856 = vmatpush3.bf16.msra.mxu1 %v3064_v20 }
 0x49c   : > { %2857 = vmatprep.subr.bf16.mxu1 %v3065_v21 }
 0x49f   : > { %2858 = vmatpush3.bf16.msra.mxu1 %v3065_v21 }
 0x54a   : > { %v2829_v23 = vpop.f32.mrf.mxu1 }
 0x54c   : > { %v633_v25 = vpop.f32.mrf.mxu1 }
 0x54e   : > { %v2830_v27 = vpop.f32.mrf.mxu1 }
 0x54f   : > { %v653_v30 = vpack.c.bf16 %v2830_v27, %v2829_v23 }
 0x550   : > { %v636_v28 = vpop.f32.mrf.mxu1 }
 0x551   : > { %v652_v29 = vpack.c.bf16 %v636_v28, %v633_v25  ;;  %v3066_v25 = vld [vmem:[%s3522_s29 + $0x9c] ss:$24 sps:$4 sm:$0xff]  }
 0x553   : > { %2859 = vmatprep.mubr.msk.bf16.mxu1 %vm477_vm0, %v652_v29 }
 0x554   : > { %2860 = vmatmul.mubr.msk.bf16.vlgmr.msra.gmra.mxu1 %vm477_vm0, %v653_v30 }
 0x55a   : > { %v2837_v31 = vpop.f32.mrf.mxu1 }
 0x55b   : > { %v729_v32 = vmul.f32 0.17677669, %v2837_v31 }
 0x55c   : > { %v712_v16 = vpop.f32.mrf.mxu1 }
 0x55d   : > { %v727_v33 = vmul.f32 0.17677669, %v712_v16  ;;  %v733_v39 = vadd.f32 %v729_v32, %v3474_v2 }
 0x55e   : > { %v2838_v34 = vpop.f32.mrf.mxu1 }
 0x55f   : > { %v731_v37 = vadd.f32 %v727_v33, %v3464_v0  ;;  %v730_v40 = vmul.f32 0.17677669, %v2838_v34  ;;  %v741_v47 = vsel %vm477_vm0, %v733_v39, -inf  ;;  %v3067_v34 = vld [vmem:[%s3522_s29 + $0x6c] ss:$24 sps:$4 sm:$0xff]  }
 0x560   : > { %v715_v38 = vpop.f32.mrf.mxu1 }
 0x561   : > { %v728_v42 = vmul.f32 0.17677669, %v715_v38  ;;  %v735_v44 = vsel %vm477_vm0, %v731_v37, -inf  ;;  %v734_v46 = vadd.f32 %v730_v40, %v3479_v3 }
 0x562   : > { %736 = vmax.xlane.f32.xlu0 %v735_v44 }
 0x563   : > { %v732_v45 = vadd.f32 %v728_v42, %v3469_v1  ;;  %v744_v50 = vsel %vm477_vm0, %v734_v46, -inf }
 0x565   : > { %v738_v48 = vsel %vm477_vm0, %v732_v45, -inf }
 0x566   : > { %742 = vmax.xlane.f32.xlu0 %v741_v47  ;;  %739 = vmax.xlane.f32.xlu1 %v738_v48 }
 0x56a   : > { %745 = vmax.xlane.f32.xlu0 %v744_v50 }
 0x5eb   : > { %v737_v52 = vpop.xlane.xlu0 %736 }
 0x5ec   : > { %v747_v56 = vsub.f32 %v731_v37, %v737_v52 }
 0x5ee   : > { %v751_v60 = vmul.f32 1.442695, %v747_v56 }
 0x5ef   : > { %v743_v57 = vpop.xlane.xlu0 %742  ;;  %v740_v58 = vpop.xlane.xlu1 %739 }
 0x5f0   : > { %v749_v59 = vsub.f32 %v733_v39, %v743_v57  ;;  %v748_v62 = vsub.f32 %v732_v45, %v740_v58 }
 0x5f2   : > { %v755_v61 = vmul.f32 1.442695, %v749_v59  ;;  %v753_v5 = vmul.f32 1.442695, %v748_v62 }
 0x5f3   : > { %v746_v63 = vpop.xlane.xlu0 %745 }
 0x5f4   : > { %3128 = vpow2.f32 %v755_v61  ;;  %v750_v4 = vsub.f32 %v734_v46, %v746_v63 }
 0x5f5   : > { %3130 = vpow2.f32 %v751_v60 }
 0x5f6   : > { %v757_v6 = vmul.f32 1.442695, %v750_v4 }
 0x5f8   : > { %3132 = vpow2.f32 %v757_v6 }
 0x5f9   : > { %3134 = vpow2.f32 %v753_v5 }
 0x601   : > { %v3129_v7 = vpop.eup %3128 }
 0x602   : > { %v765_v8 = vsel %vm477_vm0, %v3129_v7, 0.0  ;;  %v3131_v9 = vpop.eup %3130 }
 0x603   : > { %766 = vadd.xlane.f32.xlu0 %v765_v8  ;;  %v759_v11 = vsel %vm477_vm0, %v3131_v9, 0.0 }
 0x605   : > { %v3133_v10 = vpop.eup %3132 }
 0x606   : > { %v768_v12 = vsel %vm477_vm0, %v3133_v10, 0.0  ;;  %v3135_v17 = vpop.eup %3134 }
 0x607   : > { %760 = vadd.xlane.f32.xlu0 %v759_v11  ;;  %769 = vadd.xlane.f32.xlu1 %v768_v12  ;;  %v762_v18 = vsel %vm477_vm0, %v3135_v17, 0.0 }
 0x60b   : > { %763 = vadd.xlane.f32.xlu1 %v762_v18 }
 0x61c   : > { %783 = vrot.lane.b32.xlu1 %v3610_v55, %s3383_s10 }
 0x61d   : > { %785 = vrot.lane.b32.xlu0 %v3602_v22, %s3383_s10 }
 0x620   : > { %990 = vrot.lane.b32.xlu1 %v3567_v35, %s3384_s11 }
 0x621   : > { %984 = vrot.lane.b32.xlu0 %v3559_v24, %s3384_s11 }
 0x624   : > { %988 = vrot.lane.b32.xlu1 %v3569_v36, %s3384_s11 }
 0x625   : > { %1251 = vrot.lane.b32.xlu0 %v3567_v35, %s3385_s12 }
 0x628   : > { %986 = vrot.lane.b32.xlu1 %v3579_v41, %s3384_s11 }
 0x629   : > { %1245 = vrot.lane.b32.xlu0 %v3559_v24, %s3385_s12 }
 0x62c   : > { %1249 = vrot.lane.b32.xlu1 %v3569_v36, %s3385_s12 }
 0x630   : > { %1247 = vrot.lane.b32.xlu1 %v3579_v41, %s3385_s12 }
 0x68c   : > { %v767_v19 = vpop.xlane.xlu0 %766 }
 0x690   : > { %v761_v20 = vpop.xlane.xlu0 %760  ;;  %v770_v21 = vpop.xlane.xlu1 %769 }
 0x691   : > { %3136 = vrcp.f32 %v770_v21 }
 0x692   : > { %3138 = vrcp.f32 %v761_v20 }
 0x693   : > { %3140 = vrcp.f32 %v767_v19 }
 0x694   : > { %v786_v35 = vpop.permute.xlu0 %785  ;;  %v764_v23 = vpop.xlane.xlu1 %763 }
 0x695   : > { %3142 = vrcp.f32 %v764_v23  ;;  %2839 = vmatprep.subr.bf16.mxu0 %v786_v35 }
 0x696   : > { %2840 = vmatpush3.bf16.msra.mxu0 %v786_v35 }
 0x698   : > { %v784_v24 = vpop.permute.xlu1 %783  ;;  %v985_v46 = vpop.permute.xlu0 %984 }
 0x699   : > { %2841 = vmatprep.subr.bf16.mxu0 %v784_v24 }
 0x69a   : > { %2842 = vmatpush3.bf16.msra.mxu0 %v784_v24 }
 0x69b   : > { %2847 = vmatprep.subr.bf16.mxu0 %v3066_v25 }
 0x69c   : > { %v991_v37 = vpop.permute.xlu1 %990  ;;  %v1252_v52 = vpop.permute.xlu0 %1251 }
 0x69d   : > { %v1002_v47 = vsel %vm477_vm0, %v991_v37, 0  ;;  %v1263_v57 = vsel %vm477_vm0, %v1252_v52, 0 }
 0x69e   : > { %v3137_v36 = vpop.eup %3136 }
 0x69f   : > { %v3139_v27 = vpop.eup %3138  ;;  %v778_v29 = vmul.f32 %v3137_v36, %v3133_v10 }
 0x6a0   : > { %v3141_v41 = vpop.eup %3140  ;;  %v775_v30 = vmul.f32 %v3139_v27, %v3131_v9  ;;  %v989_v48 = vpop.permute.xlu1 %988 }
 0x6a1   : > { %v777_v16 = vmul.f32 %v3141_v41, %v3129_v7  ;;  %v999_v50 = vsel %vm477_vm0, %v989_v48, 0  ;;  %v1246_v58 = vpop.permute.xlu0 %1245 }
 0x6a2   : > { %v3143_v28 = vpop.eup %3142 }
 0x6a3   : > { %v776_v31 = vmul.f32 %v3143_v28, %v3135_v17  ;;  %v780_v33 = vpack.c.bf16 %v778_v29, %v777_v16 }
 0x6a4   : > { %v987_v56 = vpop.permute.xlu1 %986 }
 0x6a5   : > { %v779_v32 = vpack.c.bf16 %v776_v31, %v775_v30 }
 0x6a7   : > { %2843 = vmatprep.mubr.msk.bf16.mxu0 %vm477_vm0, %v779_v32 }
 0x6a8   : > { %2844 = vmatmul.mubr.msk.bf16.vlgmr.msra.gmra.mxu0 %vm477_vm0, %v780_v33  ;;  %v1250_v59 = vpop.permute.xlu1 %1249 }
 0x6a9   : > { %2848 = vmatpush3.bf16.msra.mxu0 %v3066_v25  ;;  %v1260_v60 = vsel %vm477_vm0, %v1250_v59, 0 }
 0x6aa   : > { %2849 = vmatprep.subr.bf16.mxu0 %v3067_v34 }
 0x6ac   : > { %v1248_v61 = vpop.permute.xlu1 %1247 }
 0x6ad   : > { %2850 = vmatpush3.bf16.msra.mxu0 %v3067_v34 }
 0x6ae   : > { %2955 = vmatprep.subr.msk.bf16.mxu0 %vm477_vm0, %v991_v37 }
 0x768   : > { %v2845_v38 = vpop.f32.mrf.mxu0 }
 0x76a   : > { %v829_v39 = vpop.f32.mrf.mxu0 }
 0x76c   : > { %v2846_v40 = vpop.f32.mrf.mxu0 }
 0x76d   : > { %v849_v45 = vpack.c.bf16 %v2846_v40, %v2845_v38 }
 0x76e   : > { %v832_v42 = vpop.f32.mrf.mxu0 }
 0x76f   : > { %v848_v44 = vpack.c.bf16 %v832_v42, %v829_v39 }
 0x771   : > { %2851 = vmatprep.mubr.msk.bf16.mxu0 %vm477_vm0, %v848_v44 }
 0x772   : > { %2852 = vmatmul.mubr.msk.bf16.vlgmr.msra.gmra.mxu0 %vm477_vm0, %v849_v45 }
 0x773   : > { %2864 = vmatpush3.bf16.xpose.msra.mxu0 %v1002_v47  ;;  %2867 = vmatprep.mubr.msk.bf16.mxu0 %vm477_vm0, %v985_v46 }
 0x774   : > { %2956 = vmatprep.subr.msk.bf16.mxu0 %vm477_vm0, %v989_v48 }
 0x77b   : > { %2866 = vmatpush3.bf16.xpose.msra.mxu0 %v999_v50 }
 0x77c   : > { %2957 = vmatprep.subr.msk.bf16.mxu0 %vm477_vm0, %v1252_v52 }
 0x782   : > { %2868 = vmatmul.mubr.msk.bf16.vlgmr.msra.gmra.mxu0 %vm477_vm0, %v987_v56 }
 0x783   : > { %2888 = vmatpush3.bf16.xpose.msra.mxu0 %v1263_v57  ;;  %2891 = vmatprep.mubr.msk.bf16.mxu0 %vm477_vm0, %v1246_v58 }
 0x784   : > { %2958 = vmatprep.subr.msk.bf16.mxu0 %vm477_vm0, %v1250_v59 }
 0x78b   : > { %2890 = vmatpush3.bf16.xpose.msra.mxu0 %v1260_v60 }
 0x792   : > { %2892 = vmatmul.mubr.msk.bf16.vlgmr.msra.gmra.mxu0 %vm477_vm0, %v1248_v61 }
 0x793   : > { %1725 = vmatprep.mubr.bf16.mxu0 %v3382_v54 }
 0x832   : > { %v3685_v62 = vpop.f32.mrf.mxu0 }
 0x834   : > { %v3687_v63 = vpop.f32.mrf.mxu0 }
 0x836   : > { %v3689_v4 = vpop.f32.mrf.mxu0 }
 0x838   : > { %v3691_v5 = vpop.f32.mrf.mxu0 }
 0x842   : > { %v2869_v6 = vpop.f32.mrf.mxu0 }
 0x843   : > { %v1055_v8 = vmul.f32 0.17677669, %v2869_v6 }
 0x844   : > { %v1038_v7 = vpop.f32.mrf.mxu0 }
 0x845   : > { %v1053_v9 = vmul.f32 0.17677669, %v1038_v7  ;;  %v1059_v17 = vadd.f32 %v1055_v8, %v3474_v2 }
 0x846   : > { %v2870_v10 = vpop.f32.mrf.mxu0 }
 0x847   : > { %v1057_v11 = vadd.f32 %v1053_v9, %v3464_v0  ;;  %v1056_v18 = vmul.f32 0.17677669, %v2870_v10  ;;  %v1067_v23 = vsel %vm477_vm0, %v1059_v17, -inf }
 0x848   : > { %v1041_v12 = vpop.f32.mrf.mxu0 }
 0x849   : > { %v1054_v19 = vmul.f32 0.17677669, %v1041_v12  ;;  %v1061_v20 = vsel %vm477_vm0, %v1057_v11, -inf  ;;  %v1060_v35 = vadd.f32 %v1056_v18, %v3479_v3 }
 0x84a   : > { %1062 = vmax.xlane.f32.xlu0 %v1061_v20 }
 0x84b   : > { %v1058_v21 = vadd.f32 %v1054_v19, %v3469_v1  ;;  %v1070_v24 = vsel %vm477_vm0, %v1060_v35, -inf }
 0x84d   : > { %v1064_v25 = vsel %vm477_vm0, %v1058_v21, -inf }
 0x84e   : > { %1068 = vmax.xlane.f32.xlu0 %v1067_v23  ;;  %1065 = vmax.xlane.f32.xlu1 %v1064_v25 }
 0x852   : > { %1071 = vmax.xlane.f32.xlu0 %v1070_v24  ;;  %v2893_v48 = vpop.f32.mrf.mxu0 }
 0x853   : > { %v1316_v58 = vmul.f32 0.17677669, %v2893_v48 }
 0x854   : > { %v1299_v50 = vpop.f32.mrf.mxu0 }
 0x855   : > { %v1314_v59 = vmul.f32 0.17677669, %v1299_v50  ;;  %v1320_v61 = vadd.f32 %v1316_v58, %v3474_v2  ;;  %v3194_v2 = vld [vmem:[%s3963_s6 + $0x30] sm:$0xff] (%p170_p11)  }
 0x856   : > { %v2894_v52 = vpop.f32.mrf.mxu0 }
 0x857   : > { %v1318_v6 = vadd.f32 %v1314_v59, %v3464_v0  ;;  %v1317_v7 = vmul.f32 0.17677669, %v2894_v52  ;;  %v1328_v10 = vsel %vm477_vm0, %v1320_v61, -inf  ;;  %v3193_v0 = vld [vmem:[%s3963_s6 + $0x38] sm:$0xff] (%p170_p11)  }
 0x858   : > { %v1302_v56 = vpop.f32.mrf.mxu0 }
 0x859   : > { %v1315_v57 = vmul.f32 0.17677669, %v1302_v56  ;;  %v1321_v9 = vadd.f32 %v1317_v7, %v3479_v3  ;;  %v3195_v3 = vld [vmem:[%s3963_s6 + $0x28] sm:$0xff] (%p170_p11)  }
 0x85b   : > { %v1319_v60 = vadd.f32 %v1315_v57, %v3469_v1  ;;  %v1331_v12 = vsel %vm477_vm0, %v1321_v9, -inf  ;;  %v3386_v1 = vmov (%p170_p11), 0.0  }
 0x85d   : > { %v1325_v8 = vsel %vm477_vm0, %v1319_v60, -inf }
 0x8d3   : > { %v1063_v36 = vpop.xlane.xlu0 %1062 }
 0x8d4   : > { %v1073_v27 = vsub.f32 %v1057_v11, %v1063_v36  ;;  %v1322_v11 = vsel %vm477_vm0, %v1318_v6, -inf }
 0x8d6   : > { %v1077_v30 = vmul.f32 1.442695, %v1073_v27 }
 0x8d7   : > { %v1069_v41 = vpop.xlane.xlu0 %1068  ;;  %v1066_v28 = vpop.xlane.xlu1 %1065 }
 0x8d8   : > { %v1075_v29 = vsub.f32 %v1059_v17, %v1069_v41  ;;  %v1074_v16 = vsub.f32 %v1058_v21, %v1066_v28 }
 0x8da   : > { %v1081_v31 = vmul.f32 1.442695, %v1075_v29  ;;  %v1079_v34 = vmul.f32 1.442695, %v1074_v16 }
 0x8db   : > { %v1072_v32 = vpop.xlane.xlu0 %1071 }
 0x8dc   : > { %3144 = vpow2.f32 %v1081_v31  ;;  %v1076_v33 = vsub.f32 %v1060_v35, %v1072_v32 }
 0x8dd   : > { %3146 = vpow2.f32 %v1077_v30 }
 0x8de   : > { %v1083_v37 = vmul.f32 1.442695, %v1076_v33 }
 0x8e0   : > { %3148 = vpow2.f32 %v1083_v37 }
 0x8e1   : > { %3150 = vpow2.f32 %v1079_v34 }
 0x8e9   : > { %v3145_v38 = vpop.eup %3144 }
 0x8ea   : > { %v1091_v39 = vsel %vm477_vm0, %v3145_v38, 0.0  ;;  %v3147_v40 = vpop.eup %3146 }
 0x8eb   : > { %1092 = vadd.xlane.f32.xlu0 %v1091_v39  ;;  %v1085_v44 = vsel %vm477_vm0, %v3147_v40, 0.0 }
 0x8ed   : > { %v3149_v42 = vpop.eup %3148 }
 0x8ee   : > { %v1094_v45 = vsel %vm477_vm0, %v3149_v42, 0.0  ;;  %v3151_v46 = vpop.eup %3150 }
 0x8ef   : > { %1086 = vadd.xlane.f32.xlu0 %v1085_v44  ;;  %1095 = vadd.xlane.f32.xlu1 %v1094_v45  ;;  %v1088_v47 = vsel %vm477_vm0, %v3151_v46, 0.0 }
 0x8f3   : > { %1089 = vadd.xlane.f32.xlu1 %v1088_v47 }
 0x904   : > { %1107 = vrot.lane.b32.xlu1 %v3610_v55, %s3384_s11 }
 0x905   : > { %1109 = vrot.lane.b32.xlu0 %v3602_v22, %s3384_s11 }
 0x924   : > { %1326 = vmax.xlane.f32.xlu0 %v1325_v8 }
 0x928   : > { %1329 = vmax.xlane.f32.xlu0 %v1328_v10  ;;  %1323 = vmax.xlane.f32.xlu1 %v1322_v11 }
 0x92c   : > { %1332 = vmax.xlane.f32.xlu1 %v1331_v12 }
 0x974   : > { %v1093_v17 = vpop.xlane.xlu0 %1092 }
 0x978   : > { %v1087_v18 = vpop.xlane.xlu0 %1086  ;;  %v1096_v19 = vpop.xlane.xlu1 %1095 }
 0x979   : > { %3152 = vrcp.f32 %v1096_v19 }
 0x97a   : > { %3154 = vrcp.f32 %v1087_v18 }
 0x97b   : > { %3156 = vrcp.f32 %v1093_v17 }
 0x97c   : > { %v1110_v20 = vpop.permute.xlu0 %1109  ;;  %v1090_v21 = vpop.xlane.xlu1 %1089 }
 0x97d   : > { %3158 = vrcp.f32 %v1090_v21  ;;  %2871 = vmatprep.subr.bf16.mxu1 %v1110_v20 }
 0x97e   : > { %2872 = vmatpush3.bf16.msra.mxu1 %v1110_v20 }
 0x980   : > { %v1108_v35 = vpop.permute.xlu1 %1107 }
 0x981   : > { %2873 = vmatprep.subr.bf16.mxu1 %v1108_v35 }
 0x982   : > { %2874 = vmatpush3.bf16.msra.mxu1 %v1108_v35 }
 0x986   : > { %v3153_v23 = vpop.eup %3152 }
 0x987   : > { %v3155_v25 = vpop.eup %3154  ;;  %v1104_v27 = vmul.f32 %v3153_v23, %v3149_v42 }
 0x988   : > { %v3157_v24 = vpop.eup %3156  ;;  %v1101_v41 = vmul.f32 %v3155_v25, %v3147_v40 }
 0x989   : > { %v1103_v29 = vmul.f32 %v3157_v24, %v3145_v38 }
 0x98a   : > { %v3159_v36 = vpop.eup %3158 }
 0x98b   : > { %v1102_v28 = vmul.f32 %v3159_v36, %v3151_v46  ;;  %v1106_v31 = vpack.c.bf16 %v1104_v27, %v1103_v29 }
 0x98d   : > { %v1105_v30 = vpack.c.bf16 %v1102_v28, %v1101_v41 }
 0x98f   : > { %2875 = vmatprep.mubr.msk.bf16.mxu1 %vm477_vm0, %v1105_v30 }
 0x990   : > { %2876 = vmatmul.mubr.msk.bf16.vlgmr.msra.gmra.mxu1 %vm477_vm0, %v1106_v31 }
 0x9ad   : > { %v1327_v16 = vpop.xlane.xlu0 %1326 }
 0x9ae   : > { %v1335_v39 = vsub.f32 %v1319_v60, %v1327_v16  ;;  %v3068_v60 = vld [vmem:[%s3522_s29 + $0xfc] ss:$24 sps:$4 sm:$0xff]  }
 0x9af   : > { %2879 = vmatprep.subr.bf16.mxu1 %v3068_v60 }
 0x9b0   : > { %v1340_v40 = vmul.f32 1.442695, %v1335_v39  ;;  %2880 = vmatpush3.bf16.msra.mxu1 %v3068_v60 }
 0x9b1   : > { %v1330_v32 = vpop.xlane.xlu0 %1329  ;;  %v1324_v33 = vpop.xlane.xlu1 %1323 }
 0x9b2   : > { %v1336_v34 = vsub.f32 %v1320_v61, %v1330_v32  ;;  %v1334_v37 = vsub.f32 %v1318_v6, %v1324_v33  ;;  %v3069_v61 = vld [vmem:[%s3522_s29 + $0xcc] ss:$24 sps:$4 sm:$0xff]   ;;  %v2861_v6 = vpop.f32.mrf.mxu1  ;;  %v3070_v32 = vld [vmem:[%s3522_s29 + $0x15c] ss:$24 sps:$4 sm:$0xff]  }
 0x9b3   : > { %2881 = vmatprep.subr.bf16.mxu1 %v3069_v61  ;;  %v3071_v33 = vld [vmem:[%s3522_s29 + $0x12c] ss:$24 sps:$4 sm:$0xff]  }
 0x9b4   : > { %v1342_v44 = vmul.f32 1.442695, %v1336_v34  ;;  %v1338_v45 = vmul.f32 1.442695, %v1334_v37  ;;  %2882 = vmatpush3.bf16.msra.mxu1 %v3069_v61  ;;  %v969_v7 = vpop.f32.mrf.mxu1  ;;  %v978_v34 = vadd.f32 %v2861_v6, %v3685_v62 }
 0x9b5   : > { %v1333_v47 = vpop.xlane.xlu1 %1332  ;;  %v970_v39 = vadd.f32 %v969_v7, %v3687_v63 }
 0x9b6   : > { %3160 = vpow2.f32 %v1342_v44  ;;  %v1337_v42 = vsub.f32 %v1321_v9, %v1333_v47  ;;  %v2862_v8 = vpop.f32.mrf.mxu1 }
 0x9b7   : > { %3162 = vpow2.f32 %v1338_v45  ;;  %v981_v47 = vadd.f32 %v2862_v8, %v3689_v4  ;;  %v2626_v8 = vld [vmem:[%s3551_s30 + $0x3] ss:$0 sm:$0xff] }
 0x9b8   : > { %v1344_v38 = vmul.f32 1.442695, %v1337_v42  ;;  %v972_v9 = vpop.f32.mrf.mxu1 }
 0x9ba   : > { %3164 = vpow2.f32 %v1344_v38  ;;  %v973_v38 = vadd.f32 %v972_v9, %v3691_v5 }
 0x9bb   : > { %3166 = vpow2.f32 %v1340_v40 }
 0x9c3   : > { %v3161_v46 = vpop.eup %3160 }
 0x9c4   : > { %v1352_v48 = vsel %vm477_vm0, %v3161_v46, 0.0  ;;  %v3163_v50 = vpop.eup %3162 }
 0x9c5   : > { %1353 = vadd.xlane.f32.xlu0 %v1352_v48  ;;  %v1346_v56 = vsel %vm477_vm0, %v3163_v50, 0.0 }
 0x9c7   : > { %v3165_v52 = vpop.eup %3164 }
 0x9c8   : > { %v1355_v57 = vsel %vm477_vm0, %v3165_v52, 0.0  ;;  %v3167_v58 = vpop.eup %3166 }
 0x9c9   : > { %1347 = vadd.xlane.f32.xlu0 %v1346_v56  ;;  %1356 = vadd.xlane.f32.xlu1 %v1355_v57  ;;  %v1349_v59 = vsel %vm477_vm0, %v3167_v58, 0.0 }
 0x9cd   : > { %1350 = vadd.xlane.f32.xlu1 %v1349_v59 }
 0x9de   : > { %1368 = vrot.lane.b32.xlu1 %v3610_v55, %s3385_s12 }
 0x9df   : > { %1370 = vrot.lane.b32.xlu0 %v3602_v22, %s3385_s12 }
 0xa4e   : > { %v1354_v10 = vpop.xlane.xlu0 %1353 }
 0xa50   : > { %v2877_v11 = vpop.f32.mrf.mxu1 }
 0xa52   : > { %v1153_v12 = vpop.f32.mrf.mxu1  ;;  %v1348_v17 = vpop.xlane.xlu0 %1347 }
 0xa53   : > { %v1357_v18 = vpop.xlane.xlu1 %1356 }
 0xa54   : > { %v2878_v19 = vpop.f32.mrf.mxu1  ;;  %3168 = vrcp.f32 %v1357_v18 }
 0xa55   : > { %3170 = vrcp.f32 %v1348_v17  ;;  %v1173_v23 = vpack.c.bf16 %v2878_v19, %v2877_v11 }
 0xa56   : > { %v1156_v20 = vpop.f32.mrf.mxu1  ;;  %v1371_v21 = vpop.permute.xlu0 %1370  ;;  %3172 = vrcp.f32 %v1354_v10 }
 0xa57   : > { %v1172_v35 = vpack.c.bf16 %v1156_v20, %v1153_v12  ;;  %v1351_v55 = vpop.xlane.xlu1 %1350  ;;  %2895 = vmatprep.subr.bf16.mxu1 %v1371_v21 }
 0xa58   : > { %3174 = vrcp.f32 %v1351_v55 }
 0xa59   : > { %2883 = vmatprep.mubr.msk.bf16.mxu1 %vm477_vm0, %v1172_v35  ;;  %v3074_v35 = vld [vmem:[%s3522_s29 + $0x164] ss:$24 sps:$4 sm:$0xff]  }
 0xa5a   : > { %2884 = vmatmul.mubr.msk.bf16.vlgmr.msra.gmra.mxu1 %vm477_vm0, %v1173_v23  ;;  %1693 = vmatprep.subr.bf16.mxu0 %v3074_v35  ;;  %v2627_v35 = vld [vmem:[%s3551_s30 + $0x4] ss:$0 sm:$0xff] }
 0xa5b   : > { %2896 = vmatpush3.bf16.msra.mxu1 %v1371_v21  ;;  %v1369_v22 = vpop.permute.xlu1 %1368  ;;  %v3072_v21 = vld [vmem:[%s3522_s29 + $0x160] ss:$24 sps:$4 sm:$0xff]  }
 0xa5c   : > { %2897 = vmatprep.subr.bf16.mxu1 %v1369_v22  ;;  %1694 = vmatpush1.bf16.msra.mxu0 %v3072_v21 }
 0xa5f   : > { %2898 = vmatpush3.bf16.msra.mxu1 %v1369_v22 }
 0xa60   : > { %2903 = vmatprep.subr.bf16.mxu1 %v3070_v32 }
 0xa61   : > { %v3169_v25 = vpop.eup %3168 }
 0xa62   : > { %v3171_v24 = vpop.eup %3170  ;;  %v1365_v41 = vmul.f32 %v3169_v25, %v3165_v52 }
 0xa63   : > { %v3173_v36 = vpop.eup %3172  ;;  %v1362_v28 = vmul.f32 %v3171_v24, %v3163_v50 }
 0xa64   : > { %v1364_v30 = vmul.f32 %v3173_v36, %v3161_v46 }
 0xa65   : > { %v3175_v27 = vpop.eup %3174 }
 0xa66   : > { %v1363_v29 = vmul.f32 %v3175_v27, %v3167_v58  ;;  %v1367_v16 = vpack.c.bf16 %v1365_v41, %v1364_v30 }
 0xa68   : > { %v1366_v31 = vpack.c.bf16 %v1363_v29, %v1362_v28 }
 0xa6a   : > { %2899 = vmatprep.mubr.msk.bf16.mxu1 %vm477_vm0, %v1366_v31 }
 0xa6b   : > { %2900 = vmatmul.mubr.msk.bf16.vlgmr.msra.gmra.mxu1 %vm477_vm0, %v1367_v16 }
 0xa6c   : > { %2904 = vmatpush3.bf16.msra.mxu1 %v3070_v32  ;;  %v3077_v32 = vld [vmem:[%s3522_s29 + $0x134] ss:$24 sps:$4 sm:$0xff]  }
 0xa6d   : > { %2905 = vmatprep.subr.bf16.mxu1 %v3071_v33  ;;  %1695 = vmatprep.subr.bf16.mxu0 %v3077_v32 }
 0xa70   : > { %2906 = vmatpush3.bf16.msra.mxu1 %v3071_v33  ;;  %v3075_v33 = vld [vmem:[%s3522_s29 + $0x130] ss:$24 sps:$4 sm:$0xff]  }
 0xa71   : > { %1696 = vmatpush1.bf16.msra.mxu0 %v3075_v33 }
 0xb1a   : > { %v2885_v37 = vpop.f32.mrf.mxu1 }
 0xb1b   : > { %v1243_v44 = vadd.f32 %v2885_v37, %v978_v34  ;;  %v3080_v34 = vld [vmem:[%s3522_s29 + $0x104] ss:$24 sps:$4 sm:$0xff]   ;;  %v3078_v37 = vld [vmem:[%s3522_s29 + $0x100] ss:$24 sps:$4 sm:$0xff]  }
 0xb1c   : > { %v1226_v45 = vpop.f32.mrf.mxu1  ;;  %1697 = vmatprep.subr.bf16.mxu0 %v3080_v34  ;;  %v3107_v34 = vld [vmem:[%s3779_s2 + $0x10] sm:$0xff]  }
 0xb1d   : > { %v1241_v42 = vadd.f32 %v1226_v45, %v970_v39  ;;  %1698 = vmatpush1.bf16.msra.mxu0 %v3078_v37  ;;  %v3083_v39 = vld [vmem:[%s3522_s29 + $0xd4] ss:$24 sps:$4 sm:$0xff]   ;;  %v3084_v45 = vld [vmem:[%s3522_s29 + $0xa0] ss:$24 sps:$4 sm:$0xff]  }
 0xb1e   : > { %v2886_v40 = vpop.f32.mrf.mxu1  ;;  %1699 = vmatprep.subr.bf16.mxu0 %v3083_v39  ;;  %v3108_v37 = vld [vmem:[%s3779_s2 + $0x48] sm:$0xff]  }
 0xb1f   : > { %v1244_v46 = vadd.f32 %v2886_v40, %v981_v47  ;;  %v3086_v47 = vld [vmem:[%s3522_s29 + $0xa4] ss:$24 sps:$4 sm:$0xff]   ;;  %v3087_v40 = vld [vmem:[%s3522_s29 + $0x70] ss:$24 sps:$4 sm:$0xff]  }
 0xb20   : > { %v1229_v48 = vpop.f32.mrf.mxu1  ;;  %v3109_v39 = vld [vmem:[%s3779_s2 + $0x8] sm:$0xff]  }
 0xb21   : > { %v1242_v50 = vadd.f32 %v1229_v48, %v973_v38  ;;  %v3092_v38 = vld [vmem:[%s3522_s29 + $0x44] ss:$24 sps:$4 sm:$0xff]   ;;  %v3095_v48 = vld [vmem:[%s3522_s29 + $0x14] ss:$24 sps:$4 sm:$0xff]  }
 0xb2b   : > { %v2901_v52 = vpop.f32.mrf.mxu1 }
 0xb2d   : > { %v1414_v56 = vpop.f32.mrf.mxu1 }
 0xb2f   : > { %v2902_v57 = vpop.f32.mrf.mxu1 }
 0xb30   : > { %v1434_v59 = vpack.c.bf16 %v2902_v57, %v2901_v52  ;;  %v3096_v52 = vld [vmem:[%s3779_s2 + $0x78] sm:$0xff]   ;;  %v3098_v57 = vld [vmem:[%s3779_s2 + $0x70] sm:$0xff]  }
 0xb31   : > { %v1417_v58 = vpop.f32.mrf.mxu1  ;;  %2750 = vmatprep.subr.bf16.mxu1 %v3096_v52 }
 0xb32   : > { %v1433_v62 = vpack.c.bf16 %v1417_v58, %v1414_v56  ;;  %v3097_v56 = vld [vmem:[%s3779_s2 + $0x38] sm:$0xff]   ;;  %v3099_v58 = vld [vmem:[%s3779_s2 + $0x30] sm:$0xff]  }
 0xb34   : > { %2907 = vmatprep.mubr.msk.bf16.mxu1 %vm477_vm0, %v1433_v62  ;;  %v3100_v62 = vld [vmem:[%s3779_s2 + $0x68] sm:$0xff]  }
 0xb35   : > { %2908 = vmatmul.mubr.msk.bf16.vlgmr.msra.gmra.mxu1 %vm477_vm0, %v1434_v59  ;;  %v3101_v59 = vld [vmem:[%s3779_s2 + $0x28] sm:$0xff]  }
 0xb36   : > { %2751 = vmatpush3.bf16.msra.mxu1 %v3097_v56 }
 0xb37   : > { %2752 = vmatprep.subr.bf16.mxu1 %v3098_v57 }
 0xb3a   : > { %2753 = vmatpush3.bf16.msra.mxu1 %v3099_v58 }
 0xb3b   : > { %2754 = vmatprep.subr.bf16.mxu1 %v3100_v62 }
 0xb3e   : > { %2755 = vmatpush3.bf16.msra.mxu1 %v3101_v59 }
 0xbf5   : > { %v2909_v63 = vpop.f32.mrf.mxu1 }
 0xbf6   : > { %v1504_v9 = vadd.f32 %v2909_v63, %v1243_v44  ;;  %v3081_v44 = vld [vmem:[%s3522_s29 + $0xd0] ss:$24 sps:$4 sm:$0xff]   ;;  %v3102_v63 = vld [vmem:[%s3779_s2 + $0x60] sm:$0xff]  }
 0xbf7   : > { %v1487_v4 = vpop.f32.mrf.mxu1  ;;  %1700 = vmatpush1.bf16.msra.mxu0 %v3081_v44  ;;  %2756 = vmatprep.subr.bf16.mxu1 %v3102_v63  ;;  %v3110_v44 = vld [vmem:[%s3779_s2 + $0x40] sm:$0xff]  }
 0xbf8   : > { %v1502_v60 = vadd.f32 %v1487_v4, %v1241_v42  ;;  %v1508_v18 = vadd.f32 %v3357_v51, %v1504_v9  ;;  %v3089_v42 = vld [vmem:[%s3522_s29 + $0x74] ss:$24 sps:$4 sm:$0xff]   ;;  %1701 = vmatprep.subr.bf16.mxu0 %v3086_v47  ;;  %v3103_v4 = vld [vmem:[%s3779_s2 + $0x20] sm:$0xff]  }
 0xbf9   : > { %v2910_v61 = vpop.f32.mrf.mxu1  ;;  %2757 = vmatpush3.bf16.msra.mxu1 %v3103_v4 }
 0xbfa   : > { %v1506_v5 = vadd.f32 %v3365_v43, %v1502_v60  ;;  %v1505_v6 = vadd.f32 %v2910_v61, %v1244_v46  ;;  %v1518_v43 = vadd.f32 %v2626_v8, %v1508_v18  ;;  %v3090_v46 = vld [vmem:[%s3522_s29 + $0x40] ss:$24 sps:$4 sm:$0xff]  }
 0xbfb   : > { %v1490_v7 = vpop.f32.mrf.mxu1  ;;  %1702 = vmatpush1.bf16.msra.mxu0 %v3084_v45  ;;  %v3104_v60 = vld [vmem:[%s3779_s2 + $0x58] sm:$0xff]   ;;  %v3111_v45 = vld [vmem:[%s3779_s2] sm:$0xff]  }
 0xbfc   : > { %v1509_v10 = vadd.f32 %v3353_v53, %v1505_v6  ;;  %v1503_v11 = vadd.f32 %v1490_v7, %v1242_v50  ;;  %v1516_v12 = vadd.f32 %v2626_v8, %v1506_v5  ;;  %1703 = vmatprep.subr.bf16.mxu0 %v3089_v42  ;;  %v3093_v50 = vld [vmem:[%s3522_s29 + $0x10] ss:$24 sps:$4 sm:$0xff]   ;;  %v3105_v61 = vld [vmem:[%s3779_s2 + $0x18] sm:$0xff]   ;;  %2758 = vmatprep.subr.bf16.mxu1 %v3104_v60 }
 0xbfd   : > { %2759 = vmatpush3.bf16.msra.mxu1 %v3105_v61 }
 0xbfe   : > { %v1507_v17 = vadd.f32 %v3361_v49, %v1503_v11  ;;  %1520 = vadd.xlane.f32.xlu1 %v1516_v12  ;;  %v1519_v19 = vadd.f32 %v2626_v8, %v1509_v10 }
 0xbff   : > { %1704 = vmatpush1.bf16.msra.mxu0 %v3087_v40 }
 0xc00   : > { %v1517_v20 = vadd.f32 %v2626_v8, %v1507_v17  ;;  %1705 = vmatprep.subr.bf16.mxu0 %v3092_v38 }
 0xc02   : > { %1526 = vadd.xlane.f32.xlu1 %v1519_v19  ;;  %1522 = vadd.xlane.f32.xlu0 %v1517_v20 }
 0xc03   : > { %1706 = vmatpush1.bf16.msra.mxu0 %v3090_v46 }
 0xc04   : > { %1707 = vmatprep.subr.bf16.mxu0 %v3095_v48 }
 0xc06   : > { %1524 = vadd.xlane.f32.xlu0 %v1518_v43 }
 0xc07   : > { %1708 = vmatpush1.bf16.msra.mxu0 %v3093_v50 }
 0xc08   :  { %2911 = vmatprep.subr.bf16.mxu0 (%p170_p11), %v3386_v1 }
 0xc87   : > { %v1521_v55 = vpop.xlane.xlu1 %1520 }
 0xc88   : > { %v1528_v23 = vmul.f32 0.0078125, %v1521_v55 }
 0xc8a   : > { %v3748_v53 = vsub.f32 %v1516_v12, %v1528_v23 }
 0xc8b   : > { %v1527_v22 = vpop.xlane.xlu1 %1526  ;;  %v1523_v25 = vpop.xlane.xlu0 %1522 }
 0xc8c   : > { %v1531_v49 = vmul.f32 0.0078125, %v1527_v22  ;;  %v1529_v51 = vmul.f32 0.0078125, %v1523_v25  ;;  %v1536_v24 = vmul.f32 %v3748_v53, %v3748_v53  ;;  %v2628_v25 = vld [vmem:[%s3551_s30 + $0x5] ss:$0 sm:$0xff] }
 0xc8e   : > { %v3752_v36 = vsub.f32 %v1517_v20, %v1529_v51  ;;  %1540 = vadd.xlane.f32.xlu0 %v1536_v24  ;;  %v3754_v41 = vsub.f32 %v1519_v19, %v1531_v49 }
 0xc8f   : > { %v1525_v27 = vpop.xlane.xlu0 %1524 }
 0xc90   : > { %v1530_v28 = vmul.f32 0.0078125, %v1525_v27  ;;  %v1537_v29 = vmul.f32 %v3752_v36, %v3752_v36  ;;  %v1539_v31 = vmul.f32 %v3754_v41, %v3754_v41 }
 0xc92   : > { %v3758_v30 = vsub.f32 %v1518_v43, %v1530_v28  ;;  %1542 = vadd.xlane.f32.xlu1 %v1537_v29 }
 0xc94   : > { %v1538_v16 = vmul.f32 %v3758_v30, %v3758_v30 }
 0xc96   : > { %1546 = vadd.xlane.f32.xlu1 %v1539_v31  ;;  %1544 = vadd.xlane.f32.xlu0 %v1538_v16 }
 0xd17   : > { %v1541_v5 = vpop.xlane.xlu0 %1540 }
 0xd18   : > { %v1548_v6 = vmul.f32 0.0078125, %v1541_v5 }
 0xd1a   : > { %v1552_v7 = vadd.f32 1e-05, %v1548_v6 }
 0xd1b   : > { %v1543_v8 = vpop.xlane.xlu1 %1542 }
 0xd1c   : > { %3176 = vrsqrt.f32 %v1552_v7  ;;  %v1549_v9 = vmul.f32 0.0078125, %v1543_v8 }
 0xd1e   : > { %v1553_v10 = vadd.f32 1e-05, %v1549_v9 }
 0xd1f   : > { %v1547_v11 = vpop.xlane.xlu1 %1546  ;;  %v1545_v12 = vpop.xlane.xlu0 %1544 }
 0xd20   : > { %3178 = vrsqrt.f32 %v1553_v10  ;;  %v1551_v17 = vmul.f32 0.0078125, %v1547_v11  ;;  %v1550_v18 = vmul.f32 0.0078125, %v1545_v12 }
 0xd22   : > { %v1555_v19 = vadd.f32 1e-05, %v1551_v17  ;;  %v1554_v20 = vadd.f32 1e-05, %v1550_v18 }
 0xd24   : > { %3180 = vrsqrt.f32 %v1555_v19 }
 0xd25   : > { %3182 = vrsqrt.f32 %v1554_v20  ;;  %v2647_v20 = vld [vmem:[%s3551_s30 + $0x8] ss:$0 sm:$0xff] }
 0xd29   : > { %v3177_v43 = vpop.eup %3176 }
 0xd2a   : > { %v1560_v21 = vmul.f32 %v3177_v43, %v3748_v53 }
 0xd2c   : > { %v1570_v22 = vmul.f32 %v2627_v35, %v1560_v21 }
 0xd2d   : > { %v3179_v55 = vpop.eup %3178 }
 0xd2e   : > { %v1561_v23 = vmul.f32 %v3179_v55, %v3752_v36  ;;  %v3795_v27 = vadd.f32 %v2628_v25, %v1570_v22 }
 0xd30   : > { %v1571_v49 = vmul.f32 %v2627_v35, %v1561_v23 }
 0xd31   : > { %v3181_v51 = vpop.eup %3180 }
 0xd32   : > { %v3183_v24 = vpop.eup %3182  ;;  %v3797_v28 = vadd.f32 %v2628_v25, %v1571_v49  ;;  %v1563_v29 = vmul.f32 %v3181_v51, %v3754_v41 }
 0xd33   : > { %v1562_v53 = vmul.f32 %v3183_v24, %v3758_v30  ;;  %v3106_v30 = vld [vmem:[%s3779_s2 + $0x50] sm:$0xff]   ;;  %s3392_s2 = smov (%p170_p11), 18  }
 0xd34   : > { %v1600_v36 = vpack.c.bf16 %v3797_v28, %v3795_v27  ;;  %v1573_v31 = vmul.f32 %v2627_v35, %v1563_v29  ;;  %2760 = vmatprep.subr.bf16.mxu1 %v3106_v30 }
 0xd35   : > { %v1572_v16 = vmul.f32 %v2627_v35, %v1562_v53  ;;  %2761 = vmatpush3.bf16.msra.mxu1 %v3107_v34 }
 0xd36   : > { %1726 = vmatmul.mubr.bf16.vlgmr.msra.gmra.mxu0 %v1600_v36  ;;  %v3806_v33 = vadd.f32 %v2628_v25, %v1573_v31  ;;  %2762 = vmatprep.subr.bf16.mxu1 %v3108_v37 }
 0xd37   : > { %1735 = vmatprep.mubr.bf16.mxu0 %v3382_v54  ;;  %v3804_v32 = vadd.f32 %v2628_v25, %v1572_v16  ;;  %v184_v54 = vld [vmem:[%s3551_s30 + $0x6] sm:$0x3]  ;;  %2912 = vmatpush3.bf16.msra.mxu0 (%p170_p11), %v3193_v0 }
 0xd38   : > { %v1610_v42 = vrot.slane %v184_v54, %v232_v26  ;;  %v1606_v40 = vrot.slane %v184_v54, %v228_v15  ;;  %2913 = vmatprep.subr.bf16.mxu0 (%p170_p11), %v3386_v1 }
 0xd39   : > { %v1601_v41 = vpack.c.bf16 %v3806_v33, %v3804_v32  ;;  %2763 = vmatpush3.bf16.msra.mxu1 %v3109_v39 }
 0xd3a   : > { %2764 = vmatprep.subr.bf16.mxu1 %v3110_v44 }
 0xd3b   :  { %2914 = vmatpush3.bf16.msra.mxu0 (%p170_p11), %v3194_v2 }
 0xd3c   :  { %2915 = vmatprep.subr.bf16.mxu0 (%p170_p11), %v3386_v1 }
 0xd3d   : > { %2765 = vmatpush3.bf16.msra.mxu1 %v3111_v45 }
 0xd3e   : > { %1736 = vmatmul.mubr.bf16.gmra.mxu0 %v1601_v41  ;;  %2931 = vmatprep.subr.bf16.mxu1 (%p170_p11), %v3386_v1 }
 0xd3f   :  { %2916 = vmatpush3.bf16.msra.mxu0 (%p170_p11), %v3195_v3  ;;  %2927 = vmatprep.mubr.msk.bf16.mxu0 (%p170_p11), %vm3387_vm1, %v3386_v1 }
 0xd40   :  { %2917 = vmatprep.subr.bf16.mxu0 (%p170_p11), %v3386_v1 }
 0xdf6   : > { %v1727_v47 = vpop.f32.mrf.mxu0 }
 0xdf7   : > { %v1728_v52 = vadd.f32 %v1727_v47, %v1606_v40 }
 0xdf8   : > { %v1729_v38 = vpop.f32.mrf.mxu0 }
 0xdf9   : > { %v1730_v48 = vadd.f32 %v1729_v38, %v1610_v42  ;;  %v1746_v4 = vmax.f32 %v1728_v52, 0.0 }
 0xdfa   : > { %v1731_v46 = vpop.f32.mrf.mxu0 }
 0xdfb   : > { %v1732_v50 = vadd.f32 %v1731_v46, %v1606_v40  ;;  %v1747_v59 = vmax.f32 %v1730_v48, 0.0 }
 0xdfc   : > { %v1733_v56 = vpop.f32.mrf.mxu0 }
 0xdfd   : > { %v1734_v57 = vadd.f32 %v1733_v56, %v1610_v42  ;;  %v1748_v58 = vmax.f32 %v1732_v50, 0.0 }
 0xdfe   : > { %v1737_v62 = vpop.f32.mrf.mxu0 }
 0xdff   : > { %v1749_v63 = vmax.f32 %v1734_v57, 0.0  ;;  %v1754_v5 = vpack.c.bf16 %v1748_v58, %v1746_v4  ;;  %v1738_v15 = vadd.f32 %v1737_v62, %v1606_v40 }
 0xe00   : > { %v1739_v60 = vpop.f32.mrf.mxu0 }
 0xe01   : > { %v1755_v61 = vpack.c.bf16 %v1749_v63, %v1747_v59  ;;  %v1740_v26 = vadd.f32 %v1739_v60, %v1610_v42  ;;  %v1750_v12 = vmax.f32 %v1738_v15, 0.0  ;;  %v2664_v15 = vld [vmem:[%s3551_s30 + $0x9] ss:$0 sm:$0xff] }
 0xe02   : > { %v1741_v6 = vpop.f32.mrf.mxu0 }
 0xe03   : > { %v1742_v14 = vadd.f32 %v1741_v6, %v1606_v40  ;;  %1927 = vmatprep.mubr.bf16.mxu1 %v1755_v61  ;;  %v1751_v10 = vmax.f32 %v1740_v26, 0.0 }
 0xe04   : > { %v1743_v7 = vpop.f32.mrf.mxu0  ;;  %1928 = vmatmul.mubr.bf16.vlgmr.msra.gmra.mxu1 %v1754_v5 }
 0xe05   : > { %v1744_v8 = vadd.f32 %v1743_v7, %v1610_v42  ;;  %v1752_v9 = vmax.f32 %v1742_v14, 0.0 }
 0xe07   : > { %v1753_v11 = vmax.f32 %v1744_v8, 0.0  ;;  %v1756_v18 = vpack.c.bf16 %v1752_v9, %v1750_v12  ;;  %v2665_v8 = vld [vmem:[%s3551_s30 + $0xa] ss:$0 sm:$0xff] }
 0xe09   : > { %v1757_v17 = vpack.c.bf16 %v1753_v11, %v1751_v10 }
 0xe0b   : > { %1935 = vmatprep.mubr.bf16.mxu1 %v1757_v17 }
 0xe0c   : > { %1936 = vmatmul.mubr.bf16.gmra.mxu1 %v1756_v18 }
 0xe0d   :  { %2939 = vmatprep.mubr.msk.bf16.mxu1 (%p170_p11), %vm3387_vm1, %v3386_v1 }
 0xec4   : > { %v2766_v19 = vpop.f32.mrf.mxu1 }
 0xec6   : > { %v2767_v43 = vpop.f32.mrf.mxu1 }
 0xec7   : > { %v2768_v21 = vadd.f32 %v2767_v43, %v2766_v19 }
 0xec8   : > { %v2769_v35 = vpop.f32.mrf.mxu1 }
 0xec9   : > { %v1930_v55 = vadd.f32 %v2768_v21, %v2647_v20 }
 0xeca   : > { %v2770_v23 = vpop.f32.mrf.mxu1 }
 0xecb   : > { %v2771_v22 = vadd.f32 %v2770_v23, %v2769_v35  ;;  %v1944_v25 = vadd.f32 %v1930_v55, %v3795_v27 }
 0xecc   : > { %v2772_v49 = vpop.f32.mrf.mxu1 }
 0xecd   : > { %v1933_v51 = vadd.f32 %v2771_v22, %v2647_v20  ;;  %1948 = vadd.xlane.f32.xlu0 %v1944_v25 }
 0xece   : > { %v2773_v24 = vpop.f32.mrf.mxu1 }
 0xecf   : > { %v2774_v29 = vadd.f32 %v2773_v24, %v2772_v49  ;;  %v1945_v53 = vadd.f32 %v1933_v51, %v3797_v28 }
 0xed0   : > { %v2775_v36 = vpop.f32.mrf.mxu1 }
 0xed1   : > { %v1938_v31 = vadd.f32 %v2774_v29, %v2647_v20  ;;  %1950 = vadd.xlane.f32.xlu1 %v1945_v53 }
 0xed2   : > { %v2776_v16 = vpop.f32.mrf.mxu1 }
 0xed3   : > { %v2777_v41 = vadd.f32 %v2776_v16, %v2775_v36  ;;  %v1946_v30 = vadd.f32 %v1938_v31, %v3804_v32 }
 0xed5   : > { %v1941_v34 = vadd.f32 %v2777_v41, %v2647_v20  ;;  %1952 = vadd.xlane.f32.xlu0 %v1946_v30 }
 0xed7   : > { %v1947_v37 = vadd.f32 %v1941_v34, %v3806_v33 }
 0xed9   : > { %1954 = vadd.xlane.f32.xlu1 %v1947_v37 }
 0xf56   : > { %v1949_v27 = vpop.xlane.xlu0 %1948 }
 0xf57   : > { %v1956_v39 = vmul.f32 0.0078125, %v1949_v27 }
 0xf59   : > { %v1960_v44 = vsub.f32 %v1944_v25, %v1956_v39 }
 0xf5a   : > { %v1951_v45 = vpop.xlane.xlu1 %1950 }
 0xf5b   : > { %v1957_v54 = vmul.f32 0.0078125, %v1951_v45  ;;  %v1964_v47 = vmul.f32 %v1960_v44, %v1960_v44  ;;  %v3200_v45 = vld [vmem:[%s3963_s6] sm:$0xff] (%p170_p11)  }
 0xf5d   : > { %v1961_v42 = vsub.f32 %v1945_v53, %v1957_v54  ;;  %1968 = vadd.xlane.f32.xlu0 %v1964_v47 }
 0xf5e   : > { %v1953_v28 = vpop.xlane.xlu0 %1952 }
 0xf5f   : > { %v1958_v40 = vmul.f32 0.0078125, %v1953_v28  ;;  %v1965_v38 = vmul.f32 %v1961_v42, %v1961_v42 }
 0xf61   : > { %v1962_v46 = vsub.f32 %v1946_v30, %v1958_v40  ;;  %1970 = vadd.xlane.f32.xlu1 %v1965_v38 }
 0xf62   : > { %v1955_v48 = vpop.xlane.xlu1 %1954 }
 0xf63   : > { %v1959_v32 = vmul.f32 0.0078125, %v1955_v48  ;;  %v1966_v50 = vmul.f32 %v1962_v46, %v1962_v46 }
 0xf65   : > { %v1963_v52 = vsub.f32 %v1947_v37, %v1959_v32  ;;  %1972 = vadd.xlane.f32.xlu0 %v1966_v50 }
 0xf67   : > { %v1967_v33 = vmul.f32 %v1963_v52, %v1963_v52 }
 0xf69   : > { %1974 = vadd.xlane.f32.xlu1 %v1967_v33  ;;  %v2666_v33 = vld [vmem:[#allocation7 + $0x2] ss:$0 sm:$0xff] (%p170_p11) }
 0xfe6   : > { %v1969_v56 = vpop.xlane.xlu0 %1968 }
 0xfe7   : > { %v1976_v57 = vmul.f32 0.0078125, %v1969_v56 }
 0xfe9   : > { %v1980_v58 = vadd.f32 1e-05, %v1976_v57  ;;  %v2667_v57 = vld [vmem:[#allocation7 + $0x3] ss:$0 sm:$0xff] (%p170_p11) }
 0xfea   : > { %v1971_v62 = vpop.xlane.xlu1 %1970 }
 0xfeb   : > { %3184 = vrsqrt.f32 %v1980_v58  ;;  %v1977_v59 = vmul.f32 0.0078125, %v1971_v62 }
 0xfed   : > { %v1981_v63 = vadd.f32 1e-05, %v1977_v59 }
 0xfee   : > { %v1973_v4 = vpop.xlane.xlu0 %1972 }
 0xfef   : > { %3186 = vrsqrt.f32 %v1981_v63  ;;  %v1978_v60 = vmul.f32 0.0078125, %v1973_v4 }
 0xff1   : > { %v1982_v61 = vadd.f32 1e-05, %v1978_v60 }
 0xff2   : > { %v1975_v5 = vpop.xlane.xlu1 %1974 }
 0xff3   : > { %3188 = vrsqrt.f32 %v1982_v61  ;;  %v1979_v6 = vmul.f32 0.0078125, %v1975_v5 }
 0xff5   : > { %v1983_v26 = vadd.f32 1e-05, %v1979_v6  ;;  %v3201_v6 = vld [vmem:[%s3963_s6 + $0x58] sm:$0xff] (%p170_p11)  }
 0xff6   :  { %2932 = vmatpush3.bf16.msra.mxu1 (%p170_p11), %v3201_v6 }
 0xff7   : > { %3190 = vrsqrt.f32 %v1983_v26  ;;  %2933 = vmatprep.subr.bf16.mxu1 (%p170_p11), %v3386_v1 }
 0xff8   : > { %v3185_v14 = vpop.eup %3184 }
 0xff9   : > { %v1988_v7 = vmul.f32 %v3185_v14, %v1960_v44  ;;  %v3199_v44 = vld [vmem:[%s3963_s6 + $0x8] sm:$0xff] (%p170_p11)   ;;  %v3202_v14 = vld [vmem:[%s3963_s6 + $0x50] sm:$0xff] (%p170_p11)  }
 0xffa   :  { %2934 = vmatpush3.bf16.msra.mxu1 (%p170_p11), %v3202_v14 }
 0xffb   : > { %v1998_v9 = vmul.f32 %v2664_v15, %v1988_v7  ;;  %2935 = vmatprep.subr.bf16.mxu1 (%p170_p11), %v3386_v1  ;;  %v3204_v7 = vld [vmem:[%s3963_s6 + $0x40] sm:$0xff] (%p170_p11)  }
 0xffc   : > { %v3187_v10 = vpop.eup %3186 }
 0xffd   : > { %v2008_v11 = vadd.f32 %v2665_v8, %v1998_v9   ;;  %v1989_v12 = vmul.f32 %v3187_v10, %v1961_v42  ;;  %v3388_v9 = vmov (%p170_p11), 0  }
 0xffe   :  { %3192 = vset.pattern.permute.xlu0 (%p170_p11), %v3388_v9 }
 0xfff   : > { %v1999_v17 = vmul.f32 %v2664_v15, %v1989_v12 }
0x1000   : > { %v3189_v18 = vpop.eup %3188 }
0x1001   : > { %v3828_v49 = vadd.f32 %v2665_v8, %v1999_v17   ;;  %v1990_v20 = vmul.f32 %v3189_v18, %v1962_v46 }
0x1003   : > { %v3967_v19 = vmov %v3828_v49  ;;  %v2000_v43 = vmul.f32 %v2664_v15, %v1990_v20 }
0x1004   : > { %v3191_v21 = vpop.eup %3190  ;;  %v3970_v49 = vmov %v3967_v19 }
0x1005   : > { %v2010_v35 = vadd.f32 %v2665_v8, %v2000_v43   ;;  %v1991_v55 = vmul.f32 %v3191_v21, %v1963_v52  ;;  %v3971_v43 = vmov %v2008_v11  ;;  %v3196_v49 = vld [vmem:[%s3963_s6 + $0x20] sm:$0xff] (%p170_p11)  }
0x1006   :  { %2918 = vmatpush3.bf16.msra.mxu0 (%p170_p11), %v3196_v49  ;;  %v2668_v21 = vld [vmem:[#allocation7 + $0x4] ss:$0 sm:$0xff] (%p170_p11) }
0x1007   : > { %v2001_v23 = vmul.f32 %v2664_v15, %v1991_v55  ;;  %v3969_v51 = vmov %v2010_v35  ;;  %172 = sbr.rel (!%p170_p11) target bundleno = 378 (0x17a), region = 86  ;;  %2018 = vadd.xlane.f32.xlu0 (%p170_p11), %v2010_v35  ;;  %2919 = vmatprep.subr.bf16.mxu0 (%p170_p11), %v3386_v1  ;;  %v3203_v15 = vld [vmem:[%s3963_s6 + $0x48] sm:$0xff] (%p170_p11)  }
0x1008   :  { %v3197_v51 = vld [vmem:[%s3963_s6 + $0x18] sm:$0xff] (%p170_p11)   ;;  %2936 = vmatpush3.bf16.msra.mxu1 (%p170_p11), %v3203_v15 }
0x1009   : > { %v2011_v22 = vadd.f32 %v2665_v8, %v2001_v23   ;;  %2937 = vmatprep.subr.bf16.mxu1 (%p170_p11), %v3386_v1  ;;  %v2275_v8 = vld [vmem:[%s3965_s8] sm:$0xff] (%p170_p11)  ;;  %s3390_s8 = smov (%p170_p11), 112  }
0x100a   :  { %2920 = vmatpush3.bf16.msra.mxu0 (%p170_p11), %v3197_v51 }
0x100b   : > { %v3968_v53 = vmov %v2011_v22  ;;  %2014 = vadd.xlane.f32.xlu0 (%p170_p11), %v2008_v11  ;;  %2921 = vmatprep.subr.bf16.mxu0 (%p170_p11), %v3386_v1 }
0x100c   :  { %v3198_v53 = vld [vmem:[%s3963_s6 + $0x10] sm:$0xff]   ;;  %2938 = vmatpush3.bf16.msra.mxu1 %v3204_v7  ;;  %s3389_s6 = smov 16  }
0x100d   :  { %2943 = vmatprep.subr.bf16.mxu1 %v3386_v1 }
0x100e   :  { %2922 = vmatpush3.bf16.msra.mxu0 %v3198_v53 }
0x100f   :  { %2020 = vadd.xlane.f32.xlu0 %v2011_v22  ;;  %2923 = vmatprep.subr.bf16.mxu0 %v3386_v1 }
0x1012   :  { %2924 = vmatpush3.bf16.msra.mxu0 %v3199_v44 }
0x1013   :  { %2925 = vmatprep.subr.bf16.mxu0 %v3386_v1 }
0x1016   :  { %2926 = vmatpush3.bf16.msra.mxu0 %v3200_v45 }
0x1090   :  { %v2019_v25 = vpop.xlane.xlu0 %2018 }
0x1091   :  { %v2024_v24 = vmul.f32 0.0078125, %v2019_v25 }
0x1093   :  { %v2028_v29 = vsub.f32 %v2010_v35, %v2024_v24 }
0x1094   :  { %v2015_v36 = vpop.xlane.xlu0 %2014 }
0x1095   :  { %v2022_v31 = vmul.f32 0.0078125, %v2015_v36  ;;  %v2032_v16 = vmul.f32 %v2028_v29, %v2028_v29 }
0x1097   :  { %v2026_v41 = vsub.f32 %v2008_v11, %v2022_v31  ;;  %2038 = vadd.xlane.f32.xlu1 %v2032_v16 }
0x1098   :  { %v2021_v30 = vpop.xlane.xlu0 %2020 }
0x1099   :  { %v2025_v34 = vmul.f32 0.0078125, %v2021_v30  ;;  %v2030_v37 = vmul.f32 %v2026_v41, %v2026_v41 }
0x109b   :  { %v3842_v27 = vsub.f32 %v2011_v22, %v2025_v34  ;;  %2034 = vadd.xlane.f32.xlu1 %v2030_v37 }
0x109d   :  { %v2033_v39 = vmul.f32 %v3842_v27, %v3842_v27 }
0x109f   :  { %2016 = vadd.xlane.f32.xlu1 %v3967_v19  ;;  %2040 = vadd.xlane.f32.xlu0 %v2033_v39  ;;  %v2272_v39 = vld [vmem:[#allocation9] sm:$0xf] }
0x10b5   :  { %2278 = vperm.xlu0 %3192, %v2275_v8  }
0x1120   :  { %v2039_v54 = vpop.xlane.xlu1 %2038 }
0x1121   :  { %v2044_v47 = vmul.f32 0.0078125, %v2039_v54 }
0x1123   :  { %v2048_v42 = vadd.f32 1e-05, %v2044_v47 }
0x1124   :  { %v2035_v28 = vpop.xlane.xlu1 %2034 }
0x1125   :  { %3205 = vrsqrt.f32 %v2048_v42  ;;  %v2042_v40 = vmul.f32 0.0078125, %v2035_v28 }
0x1127   :  { %v2046_v38 = vadd.f32 1e-05, %v2042_v40  ;;  %v3917_v40 = vand.u32 127, %v226_v13 }
0x1128   :  { %v2017_v46 = vpop.xlane.xlu1 %2016  ;;  %v2041_v10 = vpop.xlane.xlu0 %2040 }
0x1129   :  { %3207 = vrsqrt.f32 %v2046_v38  ;;  %v2023_v48 = vmul.f32 0.0078125, %v2017_v46  ;;  %v2045_v11 = vmul.f32 0.0078125, %v2041_v10 }
0x112b   :  { %v2027_v32 = vsub.f32 %v3967_v19, %v2023_v48  ;;  %v2049_v12 = vadd.f32 1e-05, %v2045_v11 }
0x112d   :  { %v2031_v50 = vmul.f32 %v2027_v32, %v2027_v32  ;;  %3209 = vrsqrt.f32 %v2049_v12 }
0x112f   :  { %2036 = vadd.xlane.f32.xlu1 %v2031_v50 }
0x1130   :  { %v2279_v51 = vpop.permute.xlu0 %2278 }
0x1132   :  { %v3206_v52 = vpop.eup %3205 }
0x1133   :  { %v2056_v56 = vmul.f32 %v3206_v52, %v2028_v29 }
0x1135   :  { %v2064_v58 = vmul.f32 %v2666_v33, %v2056_v56 }
0x1136   :  { %v3208_v62 = vpop.eup %3207 }
0x1137   :  { %v2054_v59 = vmul.f32 %v3208_v62, %v2026_v41  ;;  %v2072_v63 = vadd.f32 %v2667_v57, %v2064_v58 }
0x1139   :  { %v2062_v4 = vmul.f32 %v2666_v33, %v2054_v59  ;;  %v2075_v61 = vrot.slane %v2072_v63, 7 }
0x113a   :  { %v3210_v20 = vpop.eup %3209 }
0x113b   :  { %v2070_v60 = vadd.f32 %v2667_v57, %v2062_v4  ;;  %v2057_v43 = vmul.f32 %v3210_v20, %v3842_v27 }
0x113d   :  { %v2078_v5 = vsel %vm2077_vm2, %v2070_v60, %v2075_v61  ;;  %v2065_v35 = vmul.f32 %v2666_v33, %v2057_v43 }
0x113e   :  { %v2079_v26 = vpack.c.bf16 %v2078_v5, %v2078_v5 }
0x113f   :  { %v2073_v24 = vadd.f32 %v2667_v57, %v2065_v35 }
0x1140   :  { %2928 = vmatmul.mubr.bf16.vlgmr.msra.gmra.mxu0 %v2079_v26 }
0x1141   :  { %v2274_v30 = vpack.c.bf16 %v2073_v24, %v2072_v63 }
0x11b8   :  { %v2037_v17 = vpop.xlane.xlu1 %2036 }
0x11b9   :  { %v2043_v18 = vmul.f32 0.0078125, %v2037_v17 }
0x11bb   :  { %v2047_v19 = vadd.f32 1e-05, %v2043_v18 }
0x11bd   :  { %3211 = vrsqrt.f32 %v2047_v19 }
0x11ca   :  { %v3212_v55 = vpop.eup %3211 }
0x11cb   :  { %v2055_v29 = vmul.f32 %v3212_v55, %v2027_v32 }
0x11cd   :  { %v2063_v34 = vmul.f32 %v2666_v33, %v2055_v29 }
0x11cf   :  { %v2071_v37 = vadd.f32 %v2667_v57, %v2063_v34 }
0x11d1   :  { %v2273_v27 = vpack.c.bf16 %v2071_v37, %v2070_v60 }
0x1200   :  { %v2183_v23 = vpop.f32.mrf.mxu0 }
0x1201   :  { %v2184_v22 = vadd.f32 %v2668_v21, %v2183_v23 }
0x1202   :  { %v2929_v25 = vpop.f32.mrf.mxu0 }
0x1203   :  { %v2189_v36 = vmax.f32 %v2184_v22, 0.0 }
0x1204   :  { %v2186_v31 = vpop.f32.mrf.mxu0 }
0x1205   :  { %v2190_v16 = vpack.c.bf16 %v2189_v36, %v2189_v36 }
0x1206   :  { %v2930_v41 = vpop.f32.mrf.mxu0 }
0x1207   :  { %2940 = vmatmul.mubr.msk.bf16.vlgmr.msra.gmra.mxu1 %vm2228_vm3, %v2190_v16 }
0x1208   :  { %2944 = vmatpush3.bf16.xpose.msra.mxu1 %v2274_v30  ;;  %2947 = vmatprep.mubr.msk.bf16.mxu1 %vm3387_vm1, %v3386_v1 }
0x1209   :  { %2945 = vmatprep.subr.bf16.mxu1 %v3386_v1 }
0x1210   :  { %2946 = vmatpush3.bf16.xpose.msra.mxu1 %v2273_v27 }
0x1217   :  { %2948 = vmatmul.mubr.bf16.vlgmr.msra.gmra.mxu1 %v2272_v39 }
0x12c7   :  { %v3909_v0 = vpop.f32.mrf.mxu1 }
0x12c9   :  { %v2941_v2 = vpop.f32.mrf.mxu1 }
0x12cb   :  { %v2269_v3 = vpop.f32.mrf.mxu1 }
0x12cd   :  { %v2942_v49 = vpop.f32.mrf.mxu1 }
0x12d7   :  { %v2315_v53 = vpop.f32.mrf.mxu1 }
0x12d8   :  { %v3911_v44 = vadd.f32 %v2315_v53, %v2279_v51 }
0x12d9   :  { %v2949_v45 = vpop.f32.mrf.mxu1 }
0x12da   :  { %v2455_v54 = vsel %vm2454_vm4, %v3911_v44, -inf  ;;  %v2432_v28 = vsel %vm2431_vm5, %v3911_v44, -inf  ;;  %v2351_v62 = vsel %vm2350_vm8, %v3911_v44, -inf  ;;  %v2330_v59 = vsel %vm2329_vm9, %v3911_v44, -inf }
0x12db   :  { %2456 = vmax.xlane.f32.xlu1 %v2455_v54  ;;  %v2318_v47 = vpop.f32.mrf.mxu1 }
0x12dd   :  { %v2950_v42 = vpop.f32.mrf.mxu1 }
0x12df   :  { %2433 = vmax.xlane.f32.xlu1 %v2432_v28 }
0x12f0   :  { %2436 = vrot.lane.b32.xlu1 %v3917_v40, %s3389_s6 }
0x1364   :  { %v2457_v38 = vpop.xlane.xlu1 %2456 }
0x1365   :  { %vm2458_vm6 = vcmp.eq.f32.partialorder %v3911_v44, %v2457_v38 }
0x1368   :  { %v2434_v46 = vpop.xlane.xlu1 %2433 }
0x1369   :  { %vm2435_vm7 = vcmp.eq.f32.partialorder %v3911_v44, %v2434_v46 }
0x136c   :  { %v2437_v48 = vpop.permute.xlu1 %2436 }
0x136d   :  { %v2438_v32 = vsel %vm2435_vm7, %v2437_v48, 16  ;;  %v2459_v50 = vsel %vm2458_vm6, %v2437_v48, 16  ;;  %vm2381_vm6 = vcmask 125955   ;;  %vm2421_vm7 = vcmask 15360  }
0x136e   :  { %v2439_v52 = vsel %vm2431_vm5, %v2438_v32, 2147483647  ;;  %v2460_v33 = vsel %vm2454_vm4, %v2459_v50, 2147483647  ;;  %vm2389_vm4 = vcmask 126980  }
0x136f   :  { %v2462_v56 = vshra.s32 %v2460_v33, 16  ;;  %v2441_v57 = vshra.s32 %v2439_v52, 16  ;;  %v2461_v63 = vand.u32 65535, %v2460_v33  ;;  %v2440_v5 = vand.u32 65535, %v2439_v52 }
0x1371   :  { %v2464_v13 = vcvt.s32.f32 %v2462_v56  ;;  %v2443_v58 = vcvt.s32.f32 %v2441_v57  ;;  %v2463_v61 = vcvt.s32.f32 %v2461_v63  ;;  %v2442_v14 = vcvt.s32.f32 %v2440_v5 }
0x1373   :  { %2465 = vmin.xlane.f32.xlu1 %v2464_v13  ;;  %2444 = vmin.xlane.f32.xlu0 %v2443_v58 }
0x1377   :  { %2352 = vmax.xlane.f32.xlu1 %v2351_v62  ;;  %v2683_v62 = vmul.f32 -1.442695, %v3911_v44 }
0x1379   :  { %3213 = vpow2.f32 %v2683_v62 }
0x137b   :  { %2331 = vmax.xlane.f32.xlu1 %v2330_v59 }
0x13fc   :  { %v2466_v4 = vpop.xlane.xlu1 %2465  ;;  %v2445_v60 = vpop.xlane.xlu0 %2444 }
0x13fd   :  { %vm2467_vm10 = vcmp.eq.f32.partialorder %v2464_v13, %v2466_v4  ;;  %vm2446_vm11 = vcmp.eq.f32.partialorder %v2443_v58, %v2445_v60  ;;  %v2472_v20 = vcvt.f32.s32 %v2466_v4  ;;  %v2451_v35 = vcvt.f32.s32 %v2445_v60 }
0x13fe   :  { %v2468_v6 = vsel %vm2467_vm10, %v2463_v61, inf  ;;  %v2447_v7 = vsel %vm2446_vm11, %v2442_v14, inf  ;;  %v3214_v14 = vpop.eup %3213  ;;  %vm2427_vm10 = vcmask 285696   ;;  %vm2429_vm11 = vcmask 293888  }
0x13ff   :  { %2469 = vmin.xlane.f32.xlu1 %v2468_v6  ;;  %v2473_v21 = vshll.u32 %v2472_v20, 16  ;;  %v2452_v25 = vshll.u32 %v2451_v35, 16 }
0x1400   :  { %v2353_v26 = vpop.xlane.xlu1 %2352 }
0x1401   :  { %vm2354_vm12 = vcmp.eq.f32.partialorder %v3911_v44, %v2353_v26 }
0x1402   :  { %v2355_v15 = vsel %vm2354_vm12, %v3917_v40, 16 }
0x1403   :  { %v2356_v8 = vsel %vm2350_vm8, %v2355_v15, 2147483647  ;;  %2448 = vmin.xlane.f32.xlu1 %v2447_v7  ;;  %v2326_v15 = vadd.f32 1.0, %v3214_v14  ;;  %vm2423_vm8 = vcmask 146432  }
0x1404   :  { %v2332_v9 = vpop.xlane.xlu1 %2331  ;;  %v2358_v10 = vshra.s32 %v2356_v8, 16  ;;  %v2357_v2 = vand.u32 65535, %v2356_v8 }
0x1405   :  { %vm2333_vm13 = vcmp.eq.f32.partialorder %v3911_v44, %v2332_v9  ;;  %3215 = vrcp.f32 %v2326_v15 }
0x1406   :  { %v2334_v11 = vsel %vm2333_vm13, %v3917_v40, 16  ;;  %v2360_v12 = vcvt.s32.f32 %v2358_v10  ;;  %v2359_v3 = vcvt.s32.f32 %v2357_v2 }
0x1407   :  { %v2335_v17 = vsel %vm2329_vm9, %v2334_v11, 2147483647  ;;  %vm2425_vm9 = vcmask 277504  }
0x1408   :  { %2361 = vmin.xlane.f32.xlu0 %v2360_v12  ;;  %v2337_v18 = vshra.s32 %v2335_v17, 16  ;;  %v2336_v34 = vand.u32 65535, %v2335_v17 }
0x140a   :  { %v2339_v19 = vcvt.s32.f32 %v2337_v18  ;;  %v2338_v37 = vcvt.s32.f32 %v2336_v34 }
0x140c   :  { %2340 = vmin.xlane.f32.xlu1 %v2339_v19 }
0x1412   :  { %v3216_v7 = vpop.eup %3215 }
0x1413   :  { %v2521_v8 = vrot.slane %v3216_v7, 1  ;;  %v2412_v9 = vrot.slane %v3216_v7, 2 }
0x1488   :  { %v2470_v43 = vpop.xlane.xlu1 %2469 }
0x1489   :  { %v2471_v55 = vcvt.f32.s32 %v2470_v43 }
0x148b   :  { %v2474_v23 = vadd.s32 %v2473_v21, %v2471_v55 }
0x148c   :  { %v2449_v22 = vpop.xlane.xlu1 %2448 }
0x148d   :  { %vm2478_vm14 = vcmp.eq.s32.totalorder %v3917_v40, %v2474_v23  ;;  %v2450_v24 = vcvt.f32.s32 %v2449_v22 }
0x148e   :  { %v2688_v29 = vsel %vm2478_vm14, 1.0, %v3386_v1 }
0x148f   :  { %v2453_v36 = vadd.s32 %v2452_v25, %v2450_v24  ;;  %v2495_v31 = vrot.slane %v2688_v29, 5 }
0x1491   :  { %vm2475_vm15 = vcmp.eq.s32.totalorder %v3917_v40, %v2453_v36  ;;  %2496 = vrot.lane.b32.xlu0 %v2495_v31, %s3389_s6  ;;  %v2362_v39 = vpop.xlane.xlu0 %2361 }
0x1492   :  { %v2687_v16 = vsel %vm2475_vm15, 1.0, %v3386_v1  ;;  %vm2363_vm1 = vcmp.eq.f32.partialorder %v2360_v12, %v2362_v39  ;;  %v2368_v47 = vcvt.f32.s32 %v2362_v39 }
0x1493   :  { %v2482_v41 = vrot.slane %v2687_v16, 5  ;;  %v2364_v49 = vsel %vm2363_vm1, %v2359_v3, inf }
0x1494   :  { %v2369_v28 = vshll.u32 %v2368_v47, 16 }
0x1495   :  { %2483 = vrot.lane.b32.xlu1 %v2482_v41, %s3389_s6  ;;  %v2341_v30 = vpop.xlane.xlu1 %2340  ;;  %v2677_v41 = vld [vmem:[#allocation7 + $0x5] ss:$0 sm:$0xff] }
0x1496   :  { %vm2342_vm0 = vcmp.eq.f32.partialorder %v2339_v19, %v2341_v30  ;;  %v2347_v56 = vcvt.f32.s32 %v2341_v30  ;;  %v2267_v34 = vadd.f32 %v2677_v41, %v3909_v0 }
0x1497   :  { %v2343_v27 = vsel %vm2342_vm0, %v2338_v37, inf }
0x1498   :  { %v2348_v13 = vshll.u32 %v2347_v56, 16 }
0x14b0   :  { %2344 = vmin.xlane.f32.xlu0 %v2343_v27 }
0x14b9   :  { %2365 = vmin.xlane.f32.xlu1 %v2364_v49 }
0x1503   :  { %v2497_v51 = vpop.permute.xlu0 %2496 }
0x1504   :  { %v2499_v53 = vmul.f32 %v2497_v51, %v3911_v44 }
0x1506   :  { %2501 = vrot.lane.b32.xlu0 %v2499_v53, %s3390_s8 }
0x1507   :  { %v2484_v45 = vpop.permute.xlu1 %2483 }
0x1508   :  { %v2486_v54 = vmul.f32 %v2484_v45, %v3911_v44 }
0x150a   :  { %2488 = vrot.lane.b32.xlu1 %v2486_v54, %s3390_s8 }
0x1539   :  { %v2345_v33 = vpop.xlane.xlu0 %2344 }
0x153a   :  { %v2346_v57 = vcvt.f32.s32 %v2345_v33 }
0x153c   :  { %v2349_v58 = vadd.s32 %v2348_v13, %v2346_v57 }
0x153e   :  { %vm2371_vm5 = vcmp.eq.s32.totalorder %v3917_v40, %v2349_v58 }
0x153f   :  { %v2684_v59 = vsel %vm2371_vm5, 1.0, %v3386_v1 }
0x1540   :  { %v2378_v63 = vrot.slane %v2684_v59, 5 }
0x1542   :  { %v2366_v42 = vpop.xlane.xlu1 %2365  ;;  %v2380_v61 = vmul.f32 %v2378_v63, %v3911_v44 }
0x1543   :  { %v2367_v38 = vcvt.f32.s32 %v2366_v42 }
0x1544   :  { %v2382_v6 = vsel %vm2381_vm6, %v2380_v61, 0.0 }
0x1545   :  { %v2370_v46 = vadd.s32 %v2369_v28, %v2367_v38 }
0x1547   :  { %vm2374_vm3 = vcmp.eq.s32.totalorder %v3917_v40, %v2370_v46  ;;  %v2517_v40 = vrot.slane %v3911_v44, 7 }
0x1548   :  { %v2685_v48 = vsel %vm2374_vm3, 1.0, %v3386_v1  ;;  %v2407_v1 = vrot.slane %v3911_v44, 1 }
0x1549   :  { %v2386_v32 = vrot.slane %v2685_v48, 5 }
0x154b   :  { %v2388_v50 = vmul.f32 %v2386_v32, %v3911_v44 }
0x154d   :  { %v2390_v52 = vsel %vm2389_vm4, %v2388_v50, 0.0 }
0x154e   :  { %2391 = vadd.xlane.f32.xlu1 %v2390_v52 }
0x1578   :  { %v2502_v4 = vpop.permute.xlu0 %2501 }
0x1579   :  { %v2504_v60 = vsel %vm2389_vm4, %v2502_v4, 0.0 }
0x157a   :  { %2505 = vadd.xlane.f32.xlu0 %v2504_v60 }
0x157c   :  { %v2489_v5 = vpop.permute.xlu1 %2488 }
0x157d   :  { %v2491_v26 = vsel %vm2381_vm6, %v2489_v5, 0.0 }
0x157e   :  { %2383 = vadd.xlane.f32.xlu0 %v2382_v6  ;;  %2492 = vadd.xlane.f32.xlu1 %v2491_v26 }
0x158f   :  { %2518 = vrot.lane.b32.xlu1 %v2517_v40, %s3391_s13 }
0x1593   :  { %2408 = vrot.lane.b32.xlu1 %v2407_v1, %s3392_s2 }
0x1594   :  { %2404 = vrot.lane.b32.xlu0 %v3911_v44, %s3393_s14 }
0x1597   :  { %2522 = vrot.lane.b32.xlu1 %v2521_v8, %s3392_s2 }
0x1598   :  { %2413 = vrot.lane.b32.xlu0 %v2412_v9, %s3394_s15 }
0x15d7   :  { %v2392_v10 = vpop.xlane.xlu1 %2391 }
0x15d8   :  { %v2394_v12 = vrot.slane %v2392_v10, 1 }
0x1603   :  { %v2506_v11 = vpop.xlane.xlu0 %2505 }
0x1604   :  { %v2508_v17 = vrot.slane %v2506_v11, 1 }
0x1607   :  { %v2384_v18 = vpop.xlane.xlu0 %2383  ;;  %v2493_v19 = vpop.xlane.xlu1 %2492 }
0x1608   :  { %v2396_v20 = vadd.f32 %v2394_v12, %v2384_v18  ;;  %v2510_v43 = vadd.f32 %v2508_v17, %v2493_v19 }
0x160a   :  { %v2686_v21 = vmul.f32 -1.442695, %v2396_v20  ;;  %v2689_v35 = vmul.f32 -1.442695, %v2510_v43 }
0x160b   :  { %v2519_v31 = vpop.permute.xlu1 %2518  ;;  %v2405_v16 = vpop.permute.xlu0 %2404 }
0x160c   :  { %3217 = vpow2.f32 %v2686_v21  ;;  %v2422_v37 = vsel %vm2421_vm7, %v2267_v34, %v2405_v16  ;;  %v2530_v39 = vsel %vm2421_vm7, %v2267_v34, %v2519_v31 }
0x160d   :  { %3219 = vpow2.f32 %v2689_v35  ;;  %v2531_v51 = vsel %vm2423_vm8, %v2530_v39, %v2405_v16 }
0x160f   :  { %v2409_v30 = vpop.permute.xlu1 %2408  ;;  %v2414_v27 = vpop.permute.xlu0 %2413 }
0x1610   :  { %v2424_v2 = vsel %vm2423_vm8, %v2422_v37, %v2409_v30 }
0x1611   :  { %v2426_v49 = vsel %vm2425_vm9, %v2424_v2, %v2414_v27 }
0x1613   :  { %v2523_v3 = vpop.permute.xlu1 %2522 }
0x1614   :  { %v2532_v45 = vsel %vm2425_vm9, %v2531_v51, %v2523_v3 }
0x1619   :  { %v3218_v55 = vpop.eup %3217 }
0x161a   :  { %v3220_v23 = vpop.eup %3219  ;;  %v2400_v44 = vadd.f32 1.0, %v3218_v55 }
0x161b   :  { %v2514_v22 = vadd.f32 1.0, %v3220_v23 }
0x161c   :  { %3221 = vrcp.f32 %v2400_v44 }
0x161d   :  { %3223 = vrcp.f32 %v2514_v22 }
0x1629   :  { %v3222_v25 = vpop.eup %3221 }
0x162a   :  { %v3224_v24 = vpop.eup %3223  ;;  %v2417_v29 = vrot.slane %v3222_v25, 3 }
0x162b   :  { %v2526_v36 = vrot.slane %v3224_v24, 2 }
0x162c   :  { %2418 = vrot.lane.b32.xlu0 %v2417_v29, %s3395_s4 }
0x162d   :  { %2527 = vrot.lane.b32.xlu1 %v2526_v36, %s3395_s4 }
0x169e   :  { %v2419_v53 = vpop.permute.xlu0 %2418 }
0x169f   :  { %v2528_v54 = vpop.permute.xlu1 %2527  ;;  %v2428_v47 = vsel %vm2427_vm10, %v2426_v49, %v2419_v53 }
0x16a0   :  { %v2533_v42 = vsel %vm2427_vm10, %v2532_v45, %v2528_v54  ;;  %v2430_v28 = vsel %vm2429_vm11, %v2428_v47, 0.0 }
0x16a1   :  { %v2534_v38 = vsel %vm2429_vm11, %v2533_v42, 0.0 }
0x16a2   :  { %v2535_v0 = vsel %vm2077_vm2, %v2430_v28, %v2534_v38 }
0x16a3   :  { %2536 = vst [vmem:[%s3966_s9] sm:$0x3] %v2535_v0 }
0x16a4   :  { %2541 = vsyncpa [#allocation3], 1 }
0x16a5   :  { %2542 = vsyncpa [#allocation5], 1 }
0x16a6   :  { %2543 = vsyncpa [#allocation8], 1 }

</bundles_post_ra>
